<compile_context>
chip_gen: v7x
topology: tpu7x:2x2x1
jax: 0.10.0
libtpu: 0.0.40
codegen_flags: <defaults>
</compile_context>

<pallas_src>
import functools

import jax
import jax.numpy as jnp
from jax.experimental import pallas as pl
from jax.experimental.pallas import tpu as pltpu


_VMEM = pl.BlockSpec(memory_space=pltpu.MemorySpace.VMEM)
_NEG_INF = -1e30


def _leaky_relu(x):
    return jnp.where(x > 0, x, 0.2 * x)


def _elu(x):
    return jnp.where(x > 0, x, jnp.exp(x) - 1.0)


# --------------------------------------------------------------------------- #
# Fused Pallas kernel: all GATConv layers + global_mean_pool + Linear
# --------------------------------------------------------------------------- #
def _gat_fused_kernel(*refs, n_layers):
    """refs = (x, mask_tiled, mask_plain, diag_sel, seg_sum, rep, head_mask,
               pool, lin_w, lin_b,
               [W, Adst_wide, Asrc_wide, bias] * n_layers,
               Wf, adst_f, asrc_f, bias_f,
               out)"""
    (x_ref, mask_t_ref, mask_p_ref, diag_ref, seg_ref, rep_ref, hmask_ref,
     pool_ref, linw_ref, linb_ref) = refs[:10]
    layer_refs = refs[10:10 + 4 * n_layers]
    wf_ref, adf_ref, asf_ref, bf_ref = refs[10 + 4 * n_layers:10 + 4 * n_layers + 4]
    o_ref = refs[-1]

    # Head/layer-invariant structure constants — loaded once, reused by every layer.
    mask_t = mask_t_ref[...]   # [N, H*N]   additive 0 / -1e30 adjacency mask, tiled per head
    diag = diag_ref[...]       # [N, H*N]   diag[j', h*N+j] = (j' == j)
    seg = seg_ref[...]         # [H*N,H*N]  block-diag ones -> per-head segment sums
    rep = rep_ref[...]         # [H*N, N]   rep[h*N+j, j'] = (j == j')
    hmask = hmask_ref[...]     # [H*N,H*F]  head-matching mask

    h = x_ref[...]
    for l in range(n_layers):
        w_ref, adw_ref, asw_ref, b_ref = layer_refs[4 * l:4 * l + 4]

        # One wide projection for all heads (single MXU pass instead of 8 tiny ones).
        xp = jnp.dot(h, w_ref[...], preferred_element_type=jnp.float32)            # [N, H*F]

        # All attention coefficients via block-diagonal matmuls, already broadcast
        # into the lane-dense [N, heads*N] score layout.
        dst_plane = jnp.dot(xp, adw_ref[...], preferred_element_type=jnp.float32)  # a_dst[i,h]
        src_all = jnp.dot(xp, asw_ref[...], preferred_element_type=jnp.float32)    # a_src[i,h]
        src_row = jnp.sum(src_all * diag, axis=0, keepdims=True)                   # a_src[j,h]
        amax_row = jnp.max(src_all, axis=0, keepdims=True)                         # max_j a_src[j,h]

        # Lane-dense masked softmax over each head's 16-lane source segment.
        raw = dst_plane + src_row                                                   # [N, H*N]
        s = _leaky_relu(raw) + mask_t
        # Exact upper bound of the per-(node, head) row max; softmax is shift-
        # invariant, so this matches the reference without a segmented max.
        m = _leaky_relu(dst_plane + amax_row)
        p = jnp.exp(s - m)
        denom = jnp.dot(p, seg, preferred_element_type=jnp.float32)                 # [N, H*N]
        attn = p * pl.reciprocal(denom, approx=True)

        # Per-head aggregation as one wide matmul through a block-diag copy of xp.
        xp_blk = jnp.dot(rep, xp, preferred_element_type=jnp.float32) * hmask       # [H*N, H*F]
        out = jnp.dot(attn, xp_blk, preferred_element_type=jnp.float32) + b_ref[...]
        h = _elu(out)                                                                # [N, H*F]

    # Final GATConv: heads=1, concat=False (mean over 1 head == identity).
    xpf = jnp.dot(h, wf_ref[...], preferred_element_type=jnp.float32)               # [N, 32]
    a_dst = jax.lax.dot_general(xpf, adf_ref[...], (((1,), (1,)), ((), ())),
                                preferred_element_type=jnp.float32)                 # [N, 1]
    a_src = jax.lax.dot_general(asf_ref[...], xpf, (((1,), (1,)), ((), ())),
                                preferred_element_type=jnp.float32)                 # [1, N]
    s = _leaky_relu(a_dst + a_src) + mask_p_ref[...]
    m = jnp.max(s, axis=-1, keepdims=True)
    p = jnp.exp(s - m)
    denom = jnp.sum(p, axis=-1, keepdims=True)
    attn = p * pl.reciprocal(denom, approx=True)
    hf = jnp.dot(attn, xpf, preferred_element_type=jnp.float32) + bf_ref[...]       # [N, 32]

    # global_mean_pool (normalized one-hot matmul) fused with the final Linear.
    pooled = jnp.dot(pool_ref[...], hf, preferred_element_type=jnp.float32)         # [B, 32]
    o_ref[...] = (jnp.dot(pooled, linw_ref[...], preferred_element_type=jnp.float32)
                  + linb_ref[...])


# --------------------------------------------------------------------------- #
# Host-side constant builders + wrapper
# --------------------------------------------------------------------------- #
def build_adjacency(edge_index, n_nodes):
    # adj[dst, src] = 1 ;  GATConv default add_self_loops=True.
    adj = jnp.zeros((n_nodes, n_nodes), jnp.float32)
    adj = adj.at[edge_index[1], edge_index[0]].set(1.0)
    adj = jnp.maximum(adj, jnp.eye(n_nodes, dtype=jnp.float32))
    return adj


def _block_diag_coeff(a, n_nodes):
    """[heads, f_out] attention vector -> [heads*f_out, heads*n_nodes] matrix so that
       (xp @ M)[i, h*N+j] = sum_f xp[i, h*f_out+f] * a[h, f]  (j-independent)."""
    heads, f_out = a.shape
    blk = a[:, :, None] * jnp.eye(heads, dtype=jnp.float32)[:, None, :]   # [H, F, H]
    blk = blk.reshape(heads * f_out, heads)                               # [H*F, H]
    return jnp.repeat(blk, n_nodes, axis=1)                               # [H*F, H*N]


def gat_forward(x, edge_index, batch, convs, conv_final, lin_w, lin_b, n_graphs):
    n = x.shape[0]
    heads, f_out = convs[0]["heads"], convs[0]["f_out"]

    # Adjacency mask as an additive bias (hoisted fully out of the kernel).
    adj = build_adjacency(edge_index, n)
    mask_bias = jnp.where(adj > 0, 0.0, _NEG_INF).astype(jnp.float32)     # [N, N]
    mask_tiled = jnp.tile(mask_bias, (1, heads))                          # [N, H*N]

    # Head-structure constants for the lane-dense formulation.
    eye_n = jnp.eye(n, dtype=jnp.float32)
    eye_h = jnp.eye(heads, dtype=jnp.float32)
    diag_sel = jnp.tile(eye_n, (1, heads))                                # [N, H*N]
    rep = jnp.tile(eye_n, (heads, 1))                                     # [H*N, N]
    seg_sum = jnp.kron(eye_h, jnp.ones((n, n), jnp.float32))              # [H*N, H*N]
    head_mask = jnp.kron(eye_h, jnp.ones((n, f_out), jnp.float32))        # [H*N, H*F]

    # global_mean_pool as a normalized one-hot membership matrix.
    onehot = (batch[None, :] == jnp.arange(n_graphs)[:, None]).astype(jnp.float32)
    pool = onehot / jnp.maximum(onehot.sum(axis=1, keepdims=True), 1.0)

    args = [x, mask_tiled, mask_bias, diag_sel, seg_sum, rep, head_mask,
            pool, lin_w, lin_b.reshape(1, -1)]
    for c in convs:
        args += [c["W"],
                 _block_diag_coeff(c["adst"], n),
                 _block_diag_coeff(c["asrc"], n),
                 c["bias"].reshape(1, -1)]
    args += [conv_final["W"], conv_final["adst"], conv_final["asrc"],
             conv_final["bias"].reshape(1, -1)]

    kernel = functools.partial(_gat_fused_kernel, n_layers=len(convs))
    return pl.pallas_call(
        kernel,
        out_shape=jax.ShapeDtypeStruct((n_graphs, lin_w.shape[1]), jnp.float32),
        in_specs=[_VMEM] * len(args),
        out_specs=_VMEM,
    )(*args)


# --------------------------------------------------------------------------- #
# Deterministic parameter init (shapes follow GAT.__init__)
# --------------------------------------------------------------------------- #
def _glorot(key, shape):
    fan_in, fan_out = shape[0], shape[-1]
    lim = jnp.sqrt(6.0 / (fan_in + fan_out))
    return jax.random.uniform(key, shape, jnp.float32, -lim, lim)


def init_gatconv(key, f_in, f_out, heads, concat):
    k1, k2, k3 = jax.random.split(key, 3)
    return dict(
        W=_glorot(k1, (f_in, heads * f_out)),
        asrc=_glorot(k2, (heads, f_out)),
        adst=_glorot(k3, (heads, f_out)),
        bias=jnp.zeros((heads * f_out,) if concat else (f_out,), jnp.float32),
        heads=heads, f_out=f_out, concat=concat,
    )


# --------------------------------------------------------------------------- #
# Pure-JAX reference (same dense formulation) for a correctness check
# --------------------------------------------------------------------------- #
def _ref_gat_conv(x, adj, p):
    heads, f_out, concat = p["heads"], p["f_out"], p["concat"]
    n = x.shape[0]
    xp = (x @ p["W"]).reshape(n, heads, f_out)
    a_s = jnp.einsum("nhf,hf->nh", xp, p["asrc"])
    a_d = jnp.einsum("nhf,hf->nh", xp, p["adst"])
    s = a_d[:, None, :] + a_s[None, :, :]                 # [i, j, h]
    s = jnp.where(s > 0, s, 0.2 * s)
    s = jnp.where(adj[:, :, None] > 0, s, _NEG_INF)
    attn = jax.nn.softmax(s, axis=1)
    out = jnp.einsum("ijh,jhf->ihf", attn, xp)
    out = out.reshape(n, heads * f_out) if concat else out.mean(axis=1)
    return out + p["bias"]


def _ref_forward(x, edge_index, batch, convs, conv_final, lin_w, lin_b, n_graphs):
    adj = build_adjacency(edge_index, x.shape[0])
    h = x
    for c in convs:
        h = _ref_gat_conv(h, adj, c)
        h = jnp.where(h > 0, h, jnp.exp(h) - 1.0)
    h = _ref_gat_conv(h, adj, conv_final)
    onehot = (batch[None, :] == jnp.arange(n_graphs)[:, None]).astype(jnp.float32)
    pool = onehot / jnp.maximum(onehot.sum(axis=1, keepdims=True), 1.0)
    return pool @ h @ lin_w + lin_b


# --------------------------------------------------------------------------- #
if __name__ == "__main__":
    key = jax.random.PRNGKey(0)
    k_x, k_c0, k_c1, k_cf, k_l = jax.random.split(key, 5)

    # Model hyper-params (GAT(hidden_channels=16, n_layers=2))
    HIDDEN_CHANNELS, N_LAYERS = 16, 2
    HID, IN_HEAD, OUT_HEAD = 8, 8, 1

    # Small graph batch: 2 graphs x 8 nodes = 16 nodes (heads*N = 128 -> 1 vreg row).
    N, B = 16, 2
    x = jax.random.normal(k_x, (N, HIDDEN_CHANNELS), jnp.float32)
    batch = jnp.array([0] * 8 + [1] * 8, jnp.int32)
    edges = []
    for g in range(B):
        base = g * 8
        for i in range(8):                      # bidirectional ring per graph
            j = (i + 1) % 8
            edges.append((base + i, base + j))
            edges.append((base + j, base + i))
        edges.append((base + 0, base + 4))      # a couple of chords
        edges.append((base + 4, base + 0))
    edge_index = jnp.array(edges, jnp.int32).T  # [2, E]

    # Parameters (deterministic, shapes per GAT.__init__).
    conv_keys = jax.random.split(k_c0, N_LAYERS)
    convs = [init_gatconv(conv_keys[0], HIDDEN_CHANNELS, HID, IN_HEAD, True)]
    for i in range(N_LAYERS - 1):
        convs.append(init_gatconv(conv_keys[i + 1], HID * IN_HEAD, HID, IN_HEAD, True))
    conv_final = init_gatconv(k_cf, HID * IN_HEAD, 32, OUT_HEAD, False)
    k_lw, k_lb = jax.random.split(k_l)
    lin_w = _glorot(k_lw, (32, 2))
    lin_b = jax.random.uniform(k_lb, (2,), jnp.float32, -0.1, 0.1)

    out = gat_forward(x, edge_index, batch, convs, conv_final, lin_w, lin_b, B)
    out = jax.block_until_ready(out)

    ref = _ref_forward(x, edge_index, batch, convs, conv_final, lin_w, lin_b, B)
    assert out.shape == (B, 2), out.shape
    # 5e-3 tolerance: the only approximate step is the EUP approx-reciprocal used
    # for the softmax normalization (rel. err ~1e-4); everything else is f32-exact.
    err = jnp.max(jnp.abs(out - ref))
    assert err < 5e-3, err

    print("KERNEL_OK")
</pallas_src>

<mosaic_0001>
module attributes {stable_mosaic.version = 11 : i64} {
  func.func @_gat_fused_kernel(%arg0: memref<16x16xf32, #tpu.memory_space<vmem>>, %arg1: memref<16x128xf32, #tpu.memory_space<vmem>>, %arg2: memref<16x16xf32, #tpu.memory_space<vmem>>, %arg3: memref<16x128xf32, #tpu.memory_space<vmem>>, %arg4: memref<128x128xf32, #tpu.memory_space<vmem>>, %arg5: memref<128x16xf32, #tpu.memory_space<vmem>>, %arg6: memref<128x64xf32, #tpu.memory_space<vmem>>, %arg7: memref<2x16xf32, #tpu.memory_space<vmem>>, %arg8: memref<32x2xf32, #tpu.memory_space<vmem>>, %arg9: memref<1x2xf32, #tpu.memory_space<vmem>>, %arg10: memref<16x64xf32, #tpu.memory_space<vmem>>, %arg11: memref<64x128xf32, #tpu.memory_space<vmem>>, %arg12: memref<64x128xf32, #tpu.memory_space<vmem>>, %arg13: memref<1x64xf32, #tpu.memory_space<vmem>>, %arg14: memref<64x64xf32, #tpu.memory_space<vmem>>, %arg15: memref<64x128xf32, #tpu.memory_space<vmem>>, %arg16: memref<64x128xf32, #tpu.memory_space<vmem>>, %arg17: memref<1x64xf32, #tpu.memory_space<vmem>>, %arg18: memref<64x32xf32, #tpu.memory_space<vmem>>, %arg19: memref<1x32xf32, #tpu.memory_space<vmem>>, %arg20: memref<1x32xf32, #tpu.memory_space<vmem>>, %arg21: memref<1x32xf32, #tpu.memory_space<vmem>>, %arg22: memref<2x2xf32, #tpu.memory_space<vmem>>) attributes {dimension_semantics = [], scalar_prefetch = 0 : i64, scratch_operands = 0 : i64, tpu.core_type = #tpu.core_type<tc>} {
    %c0 = arith.constant 0 : index
    %c0_0 = arith.constant 0 : index
    %0 = vector.load %arg1[%c0, %c0_0] : memref<16x128xf32, #tpu.memory_space<vmem>>, vector<16x128xf32>
    %c0_1 = arith.constant 0 : index
    %c0_2 = arith.constant 0 : index
    %1 = vector.load %arg3[%c0_1, %c0_2] : memref<16x128xf32, #tpu.memory_space<vmem>>, vector<16x128xf32>
    %c0_3 = arith.constant 0 : index
    %c0_4 = arith.constant 0 : index
    %2 = vector.load %arg4[%c0_3, %c0_4] : memref<128x128xf32, #tpu.memory_space<vmem>>, vector<128x128xf32>
    %c0_5 = arith.constant 0 : index
    %c0_6 = arith.constant 0 : index
    %3 = vector.load %arg5[%c0_5, %c0_6] : memref<128x16xf32, #tpu.memory_space<vmem>>, vector<128x16xf32>
    %c0_7 = arith.constant 0 : index
    %c0_8 = arith.constant 0 : index
    %4 = vector.load %arg6[%c0_7, %c0_8] : memref<128x64xf32, #tpu.memory_space<vmem>>, vector<128x64xf32>
    %c0_9 = arith.constant 0 : index
    %c0_10 = arith.constant 0 : index
    %5 = vector.load %arg0[%c0_9, %c0_10] : memref<16x16xf32, #tpu.memory_space<vmem>>, vector<16x16xf32>
    %c0_11 = arith.constant 0 : index
    %c0_12 = arith.constant 0 : index
    %6 = vector.load %arg10[%c0_11, %c0_12] : memref<16x64xf32, #tpu.memory_space<vmem>>, vector<16x64xf32>
    %cst = arith.constant dense<0.000000e+00> : vector<16x64xf32>
    %7 = tpu.matmul %5, %6, %cst {dimension_numbers = #tpu.dot_dimension_numbers<[1], [0], [0], [1], [0, 0, 1, 1], [], []>} : vector<16x16xf32>, vector<16x64xf32>, vector<16x64xf32> -> vector<16x64xf32>
    %c0_13 = arith.constant 0 : index
    %c0_14 = arith.constant 0 : index
    %8 = vector.load %arg11[%c0_13, %c0_14] : memref<64x128xf32, #tpu.memory_space<vmem>>, vector<64x128xf32>
    %cst_15 = arith.constant dense<0.000000e+00> : vector<16x128xf32>
    %9 = tpu.matmul %7, %8, %cst_15 {dimension_numbers = #tpu.dot_dimension_numbers<[1], [0], [0], [1], [0, 0, 1, 1], [], []>} : vector<16x64xf32>, vector<64x128xf32>, vector<16x128xf32> -> vector<16x128xf32>
    %c0_16 = arith.constant 0 : index
    %c0_17 = arith.constant 0 : index
    %10 = vector.load %arg12[%c0_16, %c0_17] : memref<64x128xf32, #tpu.memory_space<vmem>>, vector<64x128xf32>
    %cst_18 = arith.constant dense<0.000000e+00> : vector<16x128xf32>
    %11 = tpu.matmul %7, %10, %cst_18 {dimension_numbers = #tpu.dot_dimension_numbers<[1], [0], [0], [1], [0, 0, 1, 1], [], []>} : vector<16x64xf32>, vector<64x128xf32>, vector<16x128xf32> -> vector<16x128xf32>
    %12 = arith.mulf %11, %1 : vector<16x128xf32>
    %cst_19 = arith.constant dense<0.000000e+00> : vector<128xf32>
    %13 = vector.multi_reduction <add>, %12, %cst_19 [0] : vector<16x128xf32> to vector<128xf32>
    %14 = vector.shape_cast %13 : vector<128xf32> to vector<1x128xf32>
    %cst_20 = arith.constant dense<0xFF800000> : vector<128xf32>
    %15 = vector.multi_reduction <maximumf>, %11, %cst_20 [0] : vector<16x128xf32> to vector<128xf32>
    %16 = vector.shape_cast %15 : vector<128xf32> to vector<1x128xf32>
    %17 = vector.broadcast %14 : vector<1x128xf32> to vector<16x128xf32>
    %18 = arith.addf %9, %17 : vector<16x128xf32>
    %cst_21 = arith.constant 0.000000e+00 : f32
    %19 = vector.broadcast %cst_21 : f32 to vector<16x128xf32>
    %20 = arith.cmpf ogt, %18, %19 : vector<16x128xf32>
    %cst_22 = arith.constant 2.000000e-01 : f32
    %21 = vector.broadcast %cst_22 : f32 to vector<16x128xf32>
    %22 = arith.mulf %21, %18 : vector<16x128xf32>
    %23 = arith.select %20, %18, %22 : vector<16x128xi1>, vector<16x128xf32>
    %24 = arith.addf %23, %0 : vector<16x128xf32>
    %25 = vector.broadcast %16 : vector<1x128xf32> to vector<16x128xf32>
    %26 = arith.addf %9, %25 : vector<16x128xf32>
    %cst_23 = arith.constant 0.000000e+00 : f32
    %27 = vector.broadcast %cst_23 : f32 to vector<16x128xf32>
    %28 = arith.cmpf ogt, %26, %27 : vector<16x128xf32>
    %cst_24 = arith.constant 2.000000e-01 : f32
    %29 = vector.broadcast %cst_24 : f32 to vector<16x128xf32>
    %30 = arith.mulf %29, %26 : vector<16x128xf32>
    %31 = arith.select %28, %26, %30 : vector<16x128xi1>, vector<16x128xf32>
    %32 = arith.subf %24, %31 : vector<16x128xf32>
    %33 = math.exp %32 : vector<16x128xf32>
    %cst_25 = arith.constant dense<0.000000e+00> : vector<16x128xf32>
    %34 = tpu.matmul %33, %2, %cst_25 {dimension_numbers = #tpu.dot_dimension_numbers<[1], [0], [0], [1], [0, 0, 1, 1], [], []>} : vector<16x128xf32>, vector<128x128xf32>, vector<16x128xf32> -> vector<16x128xf32>
    %35 = tpu.reciprocal %34 {approx = true} : vector<16x128xf32> -> vector<16x128xf32>
    %36 = arith.mulf %33, %35 : vector<16x128xf32>
    %cst_26 = arith.constant dense<0.000000e+00> : vector<128x64xf32>
    %37 = tpu.matmul %3, %7, %cst_26 {dimension_numbers = #tpu.dot_dimension_numbers<[1], [0], [0], [1], [0, 0, 1, 1], [], []>} : vector<128x16xf32>, vector<16x64xf32>, vector<128x64xf32> -> vector<128x64xf32>
    %38 = arith.mulf %37, %4 : vector<128x64xf32>
    %cst_27 = arith.constant dense<0.000000e+00> : vector<16x64xf32>
    %39 = tpu.matmul %36, %38, %cst_27 {dimension_numbers = #tpu.dot_dimension_numbers<[1], [0], [0], [1], [0, 0, 1, 1], [], []>} : vector<16x128xf32>, vector<128x64xf32>, vector<16x64xf32> -> vector<16x64xf32>
    %c0_28 = arith.constant 0 : index
    %c0_29 = arith.constant 0 : index
    %40 = vector.load %arg13[%c0_28, %c0_29] : memref<1x64xf32, #tpu.memory_space<vmem>>, vector<1x64xf32>
    %41 = vector.broadcast %40 : vector<1x64xf32> to vector<16x64xf32>
    %42 = arith.addf %39, %41 : vector<16x64xf32>
    %cst_30 = arith.constant 0.000000e+00 : f32
    %43 = vector.broadcast %cst_30 : f32 to vector<16x64xf32>
    %44 = arith.cmpf ogt, %42, %43 : vector<16x64xf32>
    %45 = math.exp %42 : vector<16x64xf32>
    %cst_31 = arith.constant 1.000000e+00 : f32
    %46 = vector.broadcast %cst_31 : f32 to vector<16x64xf32>
    %47 = arith.subf %45, %46 : vector<16x64xf32>
    %48 = arith.select %44, %42, %47 : vector<16x64xi1>, vector<16x64xf32>
    %c0_32 = arith.constant 0 : index
    %c0_33 = arith.constant 0 : index
    %49 = vector.load %arg14[%c0_32, %c0_33] : memref<64x64xf32, #tpu.memory_space<vmem>>, vector<64x64xf32>
    %cst_34 = arith.constant dense<0.000000e+00> : vector<16x64xf32>
    %50 = tpu.matmul %48, %49, %cst_34 {dimension_numbers = #tpu.dot_dimension_numbers<[1], [0], [0], [1], [0, 0, 1, 1], [], []>} : vector<16x64xf32>, vector<64x64xf32>, vector<16x64xf32> -> vector<16x64xf32>
    %c0_35 = arith.constant 0 : index
    %c0_36 = arith.constant 0 : index
    %51 = vector.load %arg15[%c0_35, %c0_36] : memref<64x128xf32, #tpu.memory_space<vmem>>, vector<64x128xf32>
    %cst_37 = arith.constant dense<0.000000e+00> : vector<16x128xf32>
    %52 = tpu.matmul %50, %51, %cst_37 {dimension_numbers = #tpu.dot_dimension_numbers<[1], [0], [0], [1], [0, 0, 1, 1], [], []>} : vector<16x64xf32>, vector<64x128xf32>, vector<16x128xf32> -> vector<16x128xf32>
    %c0_38 = arith.constant 0 : index
    %c0_39 = arith.constant 0 : index
    %53 = vector.load %arg16[%c0_38, %c0_39] : memref<64x128xf32, #tpu.memory_space<vmem>>, vector<64x128xf32>
    %cst_40 = arith.constant dense<0.000000e+00> : vector<16x128xf32>
    %54 = tpu.matmul %50, %53, %cst_40 {dimension_numbers = #tpu.dot_dimension_numbers<[1], [0], [0], [1], [0, 0, 1, 1], [], []>} : vector<16x64xf32>, vector<64x128xf32>, vector<16x128xf32> -> vector<16x128xf32>
    %55 = arith.mulf %54, %1 : vector<16x128xf32>
    %cst_41 = arith.constant dense<0.000000e+00> : vector<128xf32>
    %56 = vector.multi_reduction <add>, %55, %cst_41 [0] : vector<16x128xf32> to vector<128xf32>
    %57 = vector.shape_cast %56 : vector<128xf32> to vector<1x128xf32>
    %cst_42 = arith.constant dense<0xFF800000> : vector<128xf32>
    %58 = vector.multi_reduction <maximumf>, %54, %cst_42 [0] : vector<16x128xf32> to vector<128xf32>
    %59 = vector.shape_cast %58 : vector<128xf32> to vector<1x128xf32>
    %60 = vector.broadcast %57 : vector<1x128xf32> to vector<16x128xf32>
    %61 = arith.addf %52, %60 : vector<16x128xf32>
    %cst_43 = arith.constant 0.000000e+00 : f32
    %62 = vector.broadcast %cst_43 : f32 to vector<16x128xf32>
    %63 = arith.cmpf ogt, %61, %62 : vector<16x128xf32>
    %cst_44 = arith.constant 2.000000e-01 : f32
    %64 = vector.broadcast %cst_44 : f32 to vector<16x128xf32>
    %65 = arith.mulf %64, %61 : vector<16x128xf32>
    %66 = arith.select %63, %61, %65 : vector<16x128xi1>, vector<16x128xf32>
    %67 = arith.addf %66, %0 : vector<16x128xf32>
    %68 = vector.broadcast %59 : vector<1x128xf32> to vector<16x128xf32>
    %69 = arith.addf %52, %68 : vector<16x128xf32>
    %cst_45 = arith.constant 0.000000e+00 : f32
    %70 = vector.broadcast %cst_45 : f32 to vector<16x128xf32>
    %71 = arith.cmpf ogt, %69, %70 : vector<16x128xf32>
    %cst_46 = arith.constant 2.000000e-01 : f32
    %72 = vector.broadcast %cst_46 : f32 to vector<16x128xf32>
    %73 = arith.mulf %72, %69 : vector<16x128xf32>
    %74 = arith.select %71, %69, %73 : vector<16x128xi1>, vector<16x128xf32>
    %75 = arith.subf %67, %74 : vector<16x128xf32>
    %76 = math.exp %75 : vector<16x128xf32>
    %cst_47 = arith.constant dense<0.000000e+00> : vector<16x128xf32>
    %77 = tpu.matmul %76, %2, %cst_47 {dimension_numbers = #tpu.dot_dimension_numbers<[1], [0], [0], [1], [0, 0, 1, 1], [], []>} : vector<16x128xf32>, vector<128x128xf32>, vector<16x128xf32> -> vector<16x128xf32>
    %78 = tpu.reciprocal %77 {approx = true} : vector<16x128xf32> -> vector<16x128xf32>
    %79 = arith.mulf %76, %78 : vector<16x128xf32>
    %cst_48 = arith.constant dense<0.000000e+00> : vector<128x64xf32>
    %80 = tpu.matmul %3, %50, %cst_48 {dimension_numbers = #tpu.dot_dimension_numbers<[1], [0], [0], [1], [0, 0, 1, 1], [], []>} : vector<128x16xf32>, vector<16x64xf32>, vector<128x64xf32> -> vector<128x64xf32>
    %81 = arith.mulf %80, %4 : vector<128x64xf32>
    %cst_49 = arith.constant dense<0.000000e+00> : vector<16x64xf32>
    %82 = tpu.matmul %79, %81, %cst_49 {dimension_numbers = #tpu.dot_dimension_numbers<[1], [0], [0], [1], [0, 0, 1, 1], [], []>} : vector<16x128xf32>, vector<128x64xf32>, vector<16x64xf32> -> vector<16x64xf32>
    %c0_50 = arith.constant 0 : index
    %c0_51 = arith.constant 0 : index
    %83 = vector.load %arg17[%c0_50, %c0_51] : memref<1x64xf32, #tpu.memory_space<vmem>>, vector<1x64xf32>
    %84 = vector.broadcast %83 : vector<1x64xf32> to vector<16x64xf32>
    %85 = arith.addf %82, %84 : vector<16x64xf32>
    %cst_52 = arith.constant 0.000000e+00 : f32
    %86 = vector.broadcast %cst_52 : f32 to vector<16x64xf32>
    %87 = arith.cmpf ogt, %85, %86 : vector<16x64xf32>
    %88 = math.exp %85 : vector<16x64xf32>
    %cst_53 = arith.constant 1.000000e+00 : f32
    %89 = vector.broadcast %cst_53 : f32 to vector<16x64xf32>
    %90 = arith.subf %88, %89 : vector<16x64xf32>
    %91 = arith.select %87, %85, %90 : vector<16x64xi1>, vector<16x64xf32>
    %c0_54 = arith.constant 0 : index
    %c0_55 = arith.constant 0 : index
    %92 = vector.load %arg18[%c0_54, %c0_55] : memref<64x32xf32, #tpu.memory_space<vmem>>, vector<64x32xf32>
    %cst_56 = arith.constant dense<0.000000e+00> : vector<16x32xf32>
    %93 = tpu.matmul %91, %92, %cst_56 {dimension_numbers = #tpu.dot_dimension_numbers<[1], [0], [0], [1], [0, 0, 1, 1], [], []>} : vector<16x64xf32>, vector<64x32xf32>, vector<16x32xf32> -> vector<16x32xf32>
    %c0_57 = arith.constant 0 : index
    %c0_58 = arith.constant 0 : index
    %94 = vector.load %arg19[%c0_57, %c0_58] : memref<1x32xf32, #tpu.memory_space<vmem>>, vector<1x32xf32>
    %cst_59 = arith.constant dense<0.000000e+00> : vector<16x1xf32>
    %95 = tpu.matmul %93, %94, %cst_59 {dimension_numbers = #tpu.dot_dimension_numbers<[1], [1], [0], [0], [0, 0, 1, 0], [], []>} : vector<16x32xf32>, vector<1x32xf32>, vector<16x1xf32> -> vector<16x1xf32>
    %c0_60 = arith.constant 0 : index
    %c0_61 = arith.constant 0 : index
    %96 = vector.load %arg20[%c0_60, %c0_61] : memref<1x32xf32, #tpu.memory_space<vmem>>, vector<1x32xf32>
    %cst_62 = arith.constant dense<0.000000e+00> : vector<1x16xf32>
    %97 = tpu.matmul %96, %93, %cst_62 {dimension_numbers = #tpu.dot_dimension_numbers<[1], [1], [0], [0], [0, 0, 1, 0], [], []>} : vector<1x32xf32>, vector<16x32xf32>, vector<1x16xf32> -> vector<1x16xf32>
    %98 = vector.broadcast %95 : vector<16x1xf32> to vector<16x16xf32>
    %99 = vector.broadcast %97 : vector<1x16xf32> to vector<16x16xf32>
    %100 = arith.addf %98, %99 : vector<16x16xf32>
    %cst_63 = arith.constant 0.000000e+00 : f32
    %101 = vector.broadcast %cst_63 : f32 to vector<16x16xf32>
    %102 = arith.cmpf ogt, %100, %101 : vector<16x16xf32>
    %cst_64 = arith.constant 2.000000e-01 : f32
    %103 = vector.broadcast %cst_64 : f32 to vector<16x16xf32>
    %104 = arith.mulf %103, %100 : vector<16x16xf32>
    %105 = arith.select %102, %100, %104 : vector<16x16xi1>, vector<16x16xf32>
    %c0_65 = arith.constant 0 : index
    %c0_66 = arith.constant 0 : index
    %106 = vector.load %arg2[%c0_65, %c0_66] : memref<16x16xf32, #tpu.memory_space<vmem>>, vector<16x16xf32>
    %107 = arith.addf %105, %106 : vector<16x16xf32>
    %cst_67 = arith.constant dense<0xFF800000> : vector<16xf32>
    %108 = vector.multi_reduction <maximumf>, %107, %cst_67 [1] : vector<16x16xf32> to vector<16xf32>
    %109 = vector.shape_cast %108 : vector<16xf32> to vector<16x1xf32>
    %110 = vector.broadcast %109 : vector<16x1xf32> to vector<16x16xf32>
    %111 = arith.subf %107, %110 : vector<16x16xf32>
    %112 = math.exp %111 : vector<16x16xf32>
    %cst_68 = arith.constant dense<0.000000e+00> : vector<16xf32>
    %113 = vector.multi_reduction <add>, %112, %cst_68 [1] : vector<16x16xf32> to vector<16xf32>
    %114 = vector.shape_cast %113 : vector<16xf32> to vector<16x1xf32>
    %115 = tpu.reciprocal %114 {approx = true} : vector<16x1xf32> -> vector<16x1xf32>
    %116 = vector.broadcast %115 : vector<16x1xf32> to vector<16x16xf32>
    %117 = arith.mulf %112, %116 : vector<16x16xf32>
    %cst_69 = arith.constant dense<0.000000e+00> : vector<16x32xf32>
    %118 = tpu.matmul %117, %93, %cst_69 {dimension_numbers = #tpu.dot_dimension_numbers<[1], [0], [0], [1], [0, 0, 1, 1], [], []>} : vector<16x16xf32>, vector<16x32xf32>, vector<16x32xf32> -> vector<16x32xf32>
    %c0_70 = arith.constant 0 : index
    %c0_71 = arith.constant 0 : index
    %119 = vector.load %arg21[%c0_70, %c0_71] : memref<1x32xf32, #tpu.memory_space<vmem>>, vector<1x32xf32>
    %120 = vector.broadcast %119 : vector<1x32xf32> to vector<16x32xf32>
    %121 = arith.addf %118, %120 : vector<16x32xf32>
    %c0_72 = arith.constant 0 : index
    %c0_73 = arith.constant 0 : index
    %122 = vector.load %arg7[%c0_72, %c0_73] : memref<2x16xf32, #tpu.memory_space<vmem>>, vector<2x16xf32>
    %cst_74 = arith.constant dense<0.000000e+00> : vector<2x32xf32>
    %123 = tpu.matmul %122, %121, %cst_74 {dimension_numbers = #tpu.dot_dimension_numbers<[1], [0], [0], [1], [0, 0, 1, 1], [], []>} : vector<2x16xf32>, vector<16x32xf32>, vector<2x32xf32> -> vector<2x32xf32>
    %c0_75 = arith.constant 0 : index
    %c0_76 = arith.constant 0 : index
    %124 = vector.load %arg8[%c0_75, %c0_76] : memref<32x2xf32, #tpu.memory_space<vmem>>, vector<32x2xf32>
    %cst_77 = arith.constant dense<0.000000e+00> : vector<2x2xf32>
    %125 = tpu.matmul %123, %124, %cst_77 {dimension_numbers = #tpu.dot_dimension_numbers<[1], [0], [0], [1], [0, 0, 1, 1], [], []>} : vector<2x32xf32>, vector<32x2xf32>, vector<2x2xf32> -> vector<2x2xf32>
    %c0_78 = arith.constant 0 : index
    %c0_79 = arith.constant 0 : index
    %126 = vector.load %arg9[%c0_78, %c0_79] : memref<1x2xf32, #tpu.memory_space<vmem>>, vector<1x2xf32>
    %127 = vector.broadcast %126 : vector<1x2xf32> to vector<2x2xf32>
    %128 = arith.addf %125, %127 : vector<2x2xf32>
    %c0_80 = arith.constant 0 : index
    %c0_81 = arith.constant 0 : index
    %129 = vector.load %arg22[%c0_80, %c0_81] : memref<2x2xf32, #tpu.memory_space<vmem>>, vector<2x2xf32>
    tpu.vector_store %arg22[%c0_80, %c0_81], %128 {strides = array<i32>} : memref<2x2xf32, #tpu.memory_space<vmem>>, vector<2x2xf32>,
    return
  }
}

</mosaic_0001>

<bundles_post_ra>
// kernel: tpu_custom_call.1
= control target key start
LH: loop header
LB: loop body
LE: loop exit
PB: predicated region body
PF: predicated region fallthrough
CT: control target
= control target key end

     0   :  { %s3843_s0 = inlined_call_operand.hbm [shape: f32[16,16], index: 0, kind: input, shape index: {}]   ;;  %s3844_s1 = inlined_call_operand.hbm [shape: f32[16,128], index: 1, kind: input, shape index: {}]   ;;  %s3845_s2 = inlined_call_operand.hbm [shape: f32[16,16], index: 2, kind: input, shape index: {}]   ;;  %s3846_s3 = inlined_call_operand.hbm [shape: f32[16,128], index: 3, kind: input, shape index: {}]   ;;  %s3847_s4 = inlined_call_operand.vmem [shape: f32[128,128], index: 4, kind: input, shape index: {}]   ;;  %s3848_s5 = inlined_call_operand.vmem [shape: f32[128,16], index: 5, kind: input, shape index: {}]   ;;  %s3849_s6 = inlined_call_operand.vmem [shape: f32[128,64], index: 6, kind: input, shape index: {}]   ;;  %s3850_s7 = inlined_call_operand.vmem [shape: f32[2,16], index: 7, kind: input, shape index: {}]   ;;  %s3851_s8 = inlined_call_operand.vmem [shape: f32[32,2], index: 8, kind: input, shape index: {}]   ;;  %s3852_s9 = inlined_call_operand.vmem [shape: f32[1,2], index: 9, kind: input, shape index: {}]   ;;  %s3853_s10 = inlined_call_operand.hbm [shape: f32[16,64], index: 10, kind: input, shape index: {}]   ;;  %s3854_s11 = inlined_call_operand.vmem [shape: f32[64,128], index: 11, kind: input, shape index: {}]   ;;  %s3855_s12 = inlined_call_operand.vmem [shape: f32[64,128], index: 12, kind: input, shape index: {}]   ;;  %s3856_s13 = inlined_call_operand.vmem [shape: f32[1,64], index: 13, kind: input, shape index: {}]   ;;  %s3857_s14 = inlined_call_operand.vmem [shape: f32[64,64], index: 14, kind: input, shape index: {}]   ;;  %s3858_s15 = inlined_call_operand.vmem [shape: f32[64,128], index: 15, kind: input, shape index: {}]   ;;  %s3859_s16 = inlined_call_operand.vmem [shape: f32[64,128], index: 16, kind: input, shape index: {}]   ;;  %s3860_s17 = inlined_call_operand.vmem [shape: f32[1,64], index: 17, kind: input, shape index: {}]   ;;  %s3861_s18 = inlined_call_operand.vmem [shape: f32[64,32], index: 18, kind: input, shape index: {}]   ;;  %s3862_s19 = inlined_call_operand.vmem [shape: f32[1,32], index: 19, kind: input, shape index: {}]   ;;  %s3863_s20 = inlined_call_operand.vmem [shape: f32[1,32], index: 20, kind: input, shape index: {}]   ;;  %s3864_s21 = inlined_call_operand.vmem [shape: f32[1,32], index: 21, kind: input, shape index: {}]   ;;  %s3865_s22 = inlined_call_operand.hbm [shape: f32[2,2], index: 22, kind: output, shape index: {}]  }
   0x1   :  { %3874 = sst [smem:[#allocation16_spill]] %s3843_s0 }
   0x2   :  { %3875 = sst [smem:[#allocation17_spill]] %s3844_s1 }
   0x3   :  { %3876 = sst [smem:[#allocation18_spill]] %s3845_s2 }
   0x4   :  { %3877 = sst [smem:[#allocation19_spill]] %s3846_s3 }
   0x5   :  { %3878 = sst [smem:[#allocation20_spill]] %s3847_s4 }
   0x6   :  { %3879 = sst [smem:[#allocation21_spill]] %s3848_s5 }
   0x7   :  { %3880 = sst [smem:[#allocation22_spill]] %s3849_s6 }
   0x8   :  { %3881 = sst [smem:[#allocation23_spill]] %s3850_s7 }
   0x9   :  { %3882 = sst [smem:[#allocation24_spill]] %s3852_s9 }
   0xa   :  { %3883 = sst [smem:[#allocation25_spill]] %s3865_s22 }
   0xb   :  { %27 = vsyncpa [#allocation3], 0 }
   0xc   :  { %28 = vsyncpa [#allocation6], 0 }
   0xd   :  { %29 = vsyncpa [#allocation9], 0 }
   0xe   :  { %30 = vsyncpa [#allocation4], 0  ;;  %s3026_s3 = smov [#allocation5]   ;;  %s3027_s29 = smov [#allocation8]  }
   0xf   :  { %s48_s28 = sshll.u32 %s3026_s3, 4  ;;  %s72_s30 = sshll.u32 %s3027_s29, 4  ;;  %s49_s28 = int_to_ptr.vmem [resolvable:$true] %s48_s28  ;;  %s3152_s30 = int_to_ptr.vmem [resolvable:$true] %s72_s30 }
  0x10   :  { %s3884_s23 = sld [smem:[#allocation17_spill]] }
  0x16   :  { %s2886_s1 = scalar_lea.hbm %s3884_s23, 256 }
  0x17   :  { %p2887_p0 = scmp.ne.s32.totalorder %s3884_s23, %s2886_s1  ;;  %p2890_p1 = scmp.lt.u32.totalorder %s2886_s1, %s3884_s23 }
  0x19   :  { %p2892_p2 = pnand %p2890_p1, %p2887_p0 }
  0x1b   :  { %2895 = shalt.err (!%p2892_p2)
}
  0x1c   :  { %s2896_s26 = scalar_lea.vmem %s49_s28, 256  ;;  %p2901_p4 = scmp.lt.s32.totalorder %s49_s28, %s49_s28 }
  0x1d   :  { %p2897_p3 = scmp.ne.s32.totalorder %s49_s28, %s2896_s26  ;;  %p2902_p5 = scmp.lt.s32.totalorder %s2896_s26, %s2896_s26 }
  0x1f   :  { %p2903_p6 = por %p2902_p5, %p2901_p4 }
  0x21   :  { %p2904_p7 = pnand %p2903_p6, %p2897_p3 }
  0x23   :  { %2907 = shalt.err (!%p2904_p7)
}
  0x24   :  { %s3028_s2 = smov 128   ;;  %s3029_s27 = smov 8  }
  0x25   :  { %54 = dma.hbm_to_vmem [thread:$0]  %s3884_s23, 256, %s49_s28, [#allocation6], %s3028_s2, %s3028_s2, %s3029_s27  }
  0x26   :  { %s3885_s1 = sld [smem:[#allocation19_spill]] }
  0x2c   :  { %s2908_s5 = scalar_lea.hbm %s3885_s1, 256 }
  0x2d   :  { %p2909_p8 = scmp.ne.s32.totalorder %s3885_s1, %s2908_s5  ;;  %p2912_p9 = scmp.lt.u32.totalorder %s2908_s5, %s3885_s1 }
  0x2f   :  { %p2914_p10 = pnand %p2912_p9, %p2909_p8 }
  0x31   :  { %2917 = shalt.err (!%p2914_p10)
}
  0x32   :  { %s2918_s22 = scalar_lea.vmem %s3152_s30, 256  ;;  %p2923_p12 = scmp.lt.s32.totalorder %s3152_s30, %s3152_s30 }
  0x33   :  { %p2919_p11 = scmp.ne.s32.totalorder %s3152_s30, %s2918_s22  ;;  %p2924_p13 = scmp.lt.s32.totalorder %s2918_s22, %s2918_s22 }
  0x35   :  { %p2925_p0 = por %p2924_p13, %p2923_p12 }
  0x37   :  { %p2926_p1 = pnand %p2925_p0, %p2919_p11 }
  0x39   :  { %2929 = shalt.err (!%p2926_p1)
}
  0x3a   :  { %78 = dma.hbm_to_vmem [thread:$0]  %s3885_s1, 256, %s3152_s30, [#allocation9], %s3028_s2, %s3028_s2, %s3029_s27  }
  0x3b   :  { %s3030_s3 = smov [#allocation2]   ;;  %s3031_s4 = smov [#allocation7]  }
  0x3c   :  { %s36_s29 = sshll.u32 %s3030_s3, 4  ;;  %s60_s0 = sshll.u32 %s3031_s4, 4  ;;  %s37_s29 = int_to_ptr.vmem [resolvable:$true] %s36_s29  ;;  %s3189_s0 = int_to_ptr.vmem [resolvable:$true] %s60_s0 }
  0x3d   :  { %s3886_s24 = sld [smem:[#allocation16_spill]] }
  0x43   :  { %s2930_s6 = scalar_lea.hbm %s3886_s24, 256 }
  0x44   :  { %p2931_p2 = scmp.ne.s32.totalorder %s3886_s24, %s2930_s6  ;;  %p2934_p3 = scmp.lt.u32.totalorder %s2930_s6, %s3886_s24 }
  0x46   :  { %p2936_p4 = pnand %p2934_p3, %p2931_p2 }
  0x48   :  { %2939 = shalt.err (!%p2936_p4)
}
  0x49   :  { %s2940_s30 = scalar_lea.vmem %s37_s29, 256  ;;  %p2945_p6 = scmp.lt.s32.totalorder %s37_s29, %s37_s29 }
  0x4a   :  { %p2941_p5 = scmp.ne.s32.totalorder %s37_s29, %s2940_s30  ;;  %p2946_p7 = scmp.lt.s32.totalorder %s2940_s30, %s2940_s30 }
  0x4c   :  { %p2947_p8 = por %p2946_p7, %p2945_p6 }
  0x4e   :  { %p2948_p9 = pnand %p2947_p8, %p2941_p5 }
  0x50   :  { %2951 = shalt.err (!%p2948_p9)
}
  0x51   :  { %42 = dma.hbm_to_vmem [thread:$0]  %s3886_s24, 256, %s37_s29, [#allocation3], %s3028_s2, %s3028_s2, %s3029_s27  }
  0x52   :  { %s3887_s7 = sld [smem:[#allocation18_spill]] }
  0x58   :  { %s2952_s9 = scalar_lea.hbm %s3887_s7, 256 }
  0x59   :  { %p2953_p10 = scmp.ne.s32.totalorder %s3887_s7, %s2952_s9  ;;  %p2956_p11 = scmp.lt.u32.totalorder %s2952_s9, %s3887_s7 }
  0x5b   :  { %p2958_p12 = pnand %p2956_p11, %p2953_p10 }
  0x5d   :  { %2961 = shalt.err (!%p2958_p12)
}
  0x5e   :  { %s2962_s25 = scalar_lea.vmem %s3189_s0, 256  ;;  %p2967_p0 = scmp.lt.s32.totalorder %s3189_s0, %s3189_s0 }
  0x5f   :  { %p2963_p13 = scmp.ne.s32.totalorder %s3189_s0, %s2962_s25  ;;  %p2968_p1 = scmp.lt.s32.totalorder %s2962_s25, %s2962_s25 }
  0x61   :  { %p2969_p2 = por %p2968_p1, %p2967_p0 }
  0x63   :  { %p2970_p3 = pnand %p2969_p2, %p2963_p13 }
  0x65   :  { %2973 = shalt.err (!%p2970_p3)
}
  0x66   :  { %66 = dma.hbm_to_vmem [thread:$0]  %s3887_s7, 256, %s3189_s0, [#allocation6], %s3028_s2, %s3028_s2, %s3029_s27  }
  0x67   :  { %s3032_s26 = smov [#allocation10]   ;;  %s2974_s23 = scalar_lea.hbm %s3853_s10, 256 }
  0x68   :  { %s96_s30 = sshll.u32 %s3032_s26, 4  ;;  %p2975_p4 = scmp.ne.s32.totalorder %s3853_s10, %s2974_s23  ;;  %s97_s30 = int_to_ptr.vmem [resolvable:$true] %s96_s30 }
  0x69   :  { %p2978_p5 = scmp.lt.u32.totalorder %s2974_s23, %s3853_s10 }
  0x6b   :  { %p2980_p6 = pnand %p2978_p5, %p2975_p4 }
  0x6d   :  { %2983 = shalt.err (!%p2980_p6)
}
  0x6e   :  { %s2984_s22 = scalar_lea.vmem %s97_s30, 256  ;;  %p2989_p8 = scmp.lt.s32.totalorder %s97_s30, %s97_s30 }
  0x6f   :  { %p2985_p7 = scmp.ne.s32.totalorder %s97_s30, %s2984_s22  ;;  %p2990_p9 = scmp.lt.s32.totalorder %s2984_s22, %s2984_s22 }
  0x71   :  { %p2991_p10 = por %p2990_p9, %p2989_p8 }
  0x73   :  { %p2992_p11 = pnand %p2991_p10, %p2985_p7 }
  0x75   :  { %2995 = shalt.err (!%p2992_p11)
}
  0x76   :  { %102 = dma.hbm_to_vmem [thread:$0]  %s3853_s10, 256, %s97_s30, [#allocation9], %s3028_s2, %s3028_s2, %s3029_s27  }
  0x77   :  { %3018 = dma.done.wait [#allocation3], 256  }
  0x78   :  { %3019 = vsyncadd [#allocation3], 4294967040 }
  0x79   :  { %3020 = dma.done.wait [#allocation6], 512  }
  0x7a   :  { %3021 = vsyncadd [#allocation6], 4294966784 }
  0x7b   :  { %3022 = dma.done.wait [#allocation9], 512  }
  0x7c   :  { %3023 = vsyncadd [#allocation9], 4294966784  ;;  %vm196_vm0 = vcmask 130048   ;;  %v194_v0 = vld [vmem:[#allocation10] sm:$0xff]  ;;  %v195_v1 = vld [vmem:[#allocation10 + $0x8] sm:$0xff]  ;;  %vm286_vm1 = vcmask 523264  }
  0x7d   :  { %v192_v2 = vld [vmem:[#allocation2] sm:$0xff]  ;;  %v2590_v3 = vpack.c.bf16 %v195_v1, %v194_v0  ;;  %v279_v5 = vld [vmem:[%s3854_s11 + $0x8] sm:$0xff]  ;;  %v280_v9 = vld [vmem:[%s3854_s11 + $0x10] sm:$0xff]  ;;  %s3888_s9 = sld [smem:[#allocation20_spill]]  ;;  %s3889_s26 = sld [smem:[#allocation21_spill]]  ;;  %vm3034_vm14 = vmmov 0  }
  0x7e   :  { %2245 = vmatprep.mubr.msk.f32.mxu0 %vm196_vm0, %v192_v2  ;;  %v278_v4 = vld [vmem:[%s3854_s11] sm:$0xff]  ;;  %v369_v8 = vld [vmem:[%s3855_s12 + $0x8] sm:$0xff]  ;;  %v281_v11 = vld [vmem:[%s3854_s11 + $0x18] sm:$0xff]  ;;  %s3890_s6 = sld [smem:[#allocation22_spill]]  ;;  %vm1602_vm15 = vcmask 261120   ;;  %s3891_s0 = sld [smem:[#allocation23_spill]] }
  0x7f   :  { %v2594_v6 = vpack.c.bf16 %v279_v5, %v278_v4  ;;  %v368_v7 = vld [vmem:[%s3855_s12] sm:$0xff]  ;;  %2591 = vmatprep.subr.bf16.mxu0 %v2590_v3  ;;  %v370_v12 = vld [vmem:[%s3855_s12 + $0x10] sm:$0xff]  ;;  %v371_v13 = vld [vmem:[%s3855_s12 + $0x18] sm:$0xff]  ;;  %v2598_v15 = vpack.c.bf16 %v281_v11, %v280_v9  ;;  %s3892_s7 = sld [smem:[#allocation24_spill]] }
  0x80   :  { %v2610_v10 = vpack.c.bf16 %v369_v8, %v368_v7  ;;  %2593 = vmatpush3.bf16.msra.mxu0 %v2590_v3  ;;  %v193_v14 = vld [vmem:[#allocation2 + $0x8] sm:$0xff]  ;;  %v282_v16 = vld [vmem:[%s3854_s11 + $0x20] sm:$0xff]  ;;  %v2614_v18 = vpack.c.bf16 %v371_v13, %v370_v12  ;;  %v284_v22 = vld [vmem:[%s3854_s11 + $0x30] sm:$0xff] }
  0x81   :  { %2595 = vmatprep.subr.bf16.mxu1 %v2594_v6  ;;  %v283_v17 = vld [vmem:[%s3854_s11 + $0x28] sm:$0xff]  ;;  %v372_v20 = vld [vmem:[%s3855_s12 + $0x20] sm:$0xff]  ;;  %v285_v23 = vld [vmem:[%s3854_s11 + $0x38] sm:$0xff] }
  0x82   :  { %2611 = vmatprep.subr.bf16.mxu0 %v2610_v10  ;;  %2597 = vmatpush3.bf16.msra.mxu1 %v2594_v6  ;;  %v2602_v19 = vpack.c.bf16 %v283_v17, %v282_v16  ;;  %v373_v21 = vld [vmem:[%s3855_s12 + $0x28] sm:$0xff]  ;;  %v2606_v25 = vpack.c.bf16 %v285_v23, %v284_v22  ;;  %v374_v26 = vld [vmem:[%s3855_s12 + $0x30] sm:$0xff]  ;;  %v375_v27 = vld [vmem:[%s3855_s12 + $0x38] sm:$0xff] }
  0x83   :  { %2599 = vmatprep.subr.bf16.mxu1 %v2598_v15  ;;  %2246 = vmatmul.mubr.msk.f32.vlgmr.msra.gmra.mrb[0].mxu0 %vm196_vm0, %v193_v14  ;;  %v2618_v24 = vpack.c.bf16 %v373_v21, %v372_v20  ;;  %v2622_v28 = vpack.c.bf16 %v375_v27, %v374_v26  ;;  %v144_v32 = vld [vmem:[%s3888_s9] sm:$0xff]  ;;  %v145_v33 = vld [vmem:[%s3888_s9 + $0x8] sm:$0xff]  ;;  %v146_v35 = vld [vmem:[%s3888_s9 + $0x10] sm:$0xff] }
  0x84   :  { %2613 = vmatpush3.bf16.msra.mxu0 %v2610_v10  ;;  %v3301_v34 = vpack.c.bf16 %v145_v33, %v144_v32  ;;  %v147_v36 = vld [vmem:[%s3888_s9 + $0x18] sm:$0xff]  ;;  %v148_v38 = vld [vmem:[%s3888_s9 + $0x20] sm:$0xff]  ;;  %v149_v39 = vld [vmem:[%s3888_s9 + $0x28] sm:$0xff] }
  0x85   :  { %2615 = vmatprep.subr.bf16.mxu0 %v2614_v18  ;;  %v3311_v37 = vpack.c.bf16 %v147_v36, %v146_v35  ;;  %v3324_v40 = vld [vmem:[%s3889_s26] sm:$0xff]  ;;  %v3326_v41 = vpack.c.bf16 %v149_v39, %v148_v38  ;;  %v3333_v42 = vld [vmem:[%s3889_s26 + $0x8] sm:$0xff]  ;;  %v150_v43 = vld [vmem:[%s3888_s9 + $0x30] sm:$0xff] }
  0x86   :  { %2601 = vmatpush3.bf16.msra.mxu1 %v2598_v15  ;;  %v151_v44 = vld [vmem:[%s3888_s9 + $0x38] sm:$0xff]  ;;  %v3348_v45 = vld [vmem:[%s3889_s26 + $0x10] sm:$0xff]  ;;  %v152_v48 = vld [vmem:[%s3888_s9 + $0x40] sm:$0xff] }
  0x87   :  { %2603 = vmatprep.subr.bf16.mxu1 %v2602_v19  ;;  %v3350_v46 = vpack.c.bf16 %v151_v44, %v150_v43  ;;  %v3357_v47 = vld [vmem:[%s3889_s26 + $0x18] sm:$0xff]  ;;  %v153_v49 = vld [vmem:[%s3888_s9 + $0x48] sm:$0xff]  ;;  %v3372_v50 = vld [vmem:[%s3889_s26 + $0x20] sm:$0xff] }
  0x88   :  { %2617 = vmatpush3.bf16.msra.mxu0 %v2614_v18  ;;  %v3374_v51 = vpack.c.bf16 %v153_v49, %v152_v48  ;;  %v3381_v52 = vld [vmem:[%s3889_s26 + $0x28] sm:$0xff]  ;;  %v154_v53 = vld [vmem:[%s3888_s9 + $0x50] sm:$0xff]  ;;  %v155_v54 = vld [vmem:[%s3888_s9 + $0x58] sm:$0xff] }
  0x89   :  { %2619 = vmatprep.subr.bf16.mxu0 %v2618_v24  ;;  %v3396_v55 = vld [vmem:[%s3889_s26 + $0x30] sm:$0xff]  ;;  %v3398_v56 = vpack.c.bf16 %v155_v54, %v154_v53  ;;  %v3405_v57 = vld [vmem:[%s3889_s26 + $0x38] sm:$0xff]  ;;  %v3413_v58 = vld [vmem:[%s3889_s26 + $0x40] sm:$0xff] }
  0x8a   :  { %2605 = vmatpush3.bf16.msra.mxu1 %v2602_v19  ;;  %v156_v59 = vld [vmem:[%s3888_s9 + $0x60] sm:$0xff]  ;;  %v157_v60 = vld [vmem:[%s3888_s9 + $0x68] sm:$0xff]  ;;  %v158_v63 = vld [vmem:[%s3888_s9 + $0x70] sm:$0xff] }
  0x8b   :  { %2607 = vmatprep.subr.bf16.mxu1 %v2606_v25  ;;  %v3424_v61 = vpack.c.bf16 %v157_v60, %v156_v59  ;;  %v3429_v62 = vld [vmem:[%s3889_s26 + $0x48] sm:$0xff]  ;;  %v3437_v0 = vld [vmem:[%s3889_s26 + $0x50] sm:$0xff]  ;;  %v159_v1 = vld [vmem:[%s3888_s9 + $0x78] sm:$0xff] }
  0x8c   :  { %2621 = vmatpush3.bf16.msra.mxu0 %v2618_v24  ;;  %v3443_v2 = vpack.c.bf16 %v159_v1, %v158_v63  ;;  %v3453_v3 = vld [vmem:[%s3889_s26 + $0x58] sm:$0xff]  ;;  %v3462_v4 = vld [vmem:[%s3889_s26 + $0x60] sm:$0xff]  ;;  %v3469_v5 = vld [vmem:[%s3889_s26 + $0x68] sm:$0xff] }
  0x8d   :  { %2623 = vmatprep.subr.bf16.mxu0 %v2622_v28  ;;  %v3474_v6 = vld [vmem:[%s3889_s26 + $0x70] sm:$0xff]  ;;  %v3483_v7 = vld [vmem:[%s3889_s26 + $0x78] sm:$0xff] }
  0x8e   :  { %2609 = vmatpush3.bf16.msra.mxu1 %v2606_v25  ;;  %v3487_v8 = vld [vmem:[#allocation8 + $0x8] sm:$0xff]  ;;  %v3489_v9 = vld [vmem:[#allocation8] sm:$0xff] }
  0x8f   :  { %2627 = vmatprep.subr.bf16.mxu1 %v3301_v34  ;;  %v3493_v35 = vld [vmem:[#allocation5] sm:$0xff]  ;;  %v3495_v36 = vld [vmem:[#allocation5 + $0x8] sm:$0xff] }
  0x90   :  { %2625 = vmatpush3.bf16.msra.mxu0 %v2622_v28 }
 0x156   :  { %v2247_v29 = vpop.f32.mrb[0].mxu0 }
 0x157   :  { %v269_v30 = vpop.f32.mrb[1].mxu0 }
 0x158   :  { %v2658_v31 = vpack.c.bf16 %v2247_v29, %v269_v30  ;;  %2264 = vmatprep.mubr.msk.f32.mxu1 %vm286_vm1, %v269_v30  ;;  %2283 = vmatprep.mubr.msk.f32.mxu0 %vm286_vm1, %v269_v30 }
 0x159   :  { %2265 = vmatmul.mubr.msk.f32.vlgmr.msra.gmra.mrb[0].mxu1 %vm286_vm1, %v2247_v29  ;;  %2284 = vmatmul.mubr.msk.f32.vlgmr.msra.gmra.mrb[2].mxu0 %vm286_vm1, %v2247_v29 }
 0x15a   :  { %2659 = vmatprep.subr.bf16.mxu0 %v2658_v31  ;;  %2629 = vmatpush3.bf16.msra.mxu1 %v3301_v34 }
 0x15b   :  { %2661 = vmatpush3.bf16.msra.mxu0 %v2658_v31  ;;  %2631 = vmatprep.subr.bf16.mxu1 %v3311_v37 }
 0x15c   :  { %2325 = vmatprep.mubr.msk.f32.mxu0 %vm196_vm0, %v3324_v40 }
 0x15e   :  { %2633 = vmatpush3.bf16.msra.mxu1 %v3311_v37  ;;  %2326 = vmatmul.mubr.msk.f32.vlgmr.msra.gmra.mrb[4].mxu0 %vm196_vm0, %v3333_v42 }
 0x15f   :  { %2635 = vmatprep.subr.bf16.mxu1 %v3326_v41  ;;  %2328 = vmatprep.mubr.msk.f32.mxu0 %vm196_vm0, %v3348_v45 }
 0x162   :  { %2637 = vmatpush3.bf16.msra.mxu1 %v3326_v41  ;;  %2329 = vmatmul.mubr.msk.f32.gmra.mrb[6].mxu0 %vm196_vm0, %v3357_v47 }
 0x163   :  { %2639 = vmatprep.subr.bf16.mxu1 %v3350_v46  ;;  %2331 = vmatprep.mubr.msk.f32.mxu0 %vm196_vm0, %v3372_v50 }
 0x166   :  { %2641 = vmatpush3.bf16.msra.mxu1 %v3350_v46  ;;  %2332 = vmatmul.mubr.msk.f32.gmra.mrb[8].mxu0 %vm196_vm0, %v3381_v52 }
 0x167   :  { %2643 = vmatprep.subr.bf16.mxu1 %v3374_v51  ;;  %2334 = vmatprep.mubr.msk.f32.mxu0 %vm196_vm0, %v3396_v55 }
 0x16a   :  { %2645 = vmatpush3.bf16.msra.mxu1 %v3374_v51  ;;  %2335 = vmatmul.mubr.msk.f32.gmra.mrb[10].mxu0 %vm196_vm0, %v3405_v57 }
 0x16b   :  { %2647 = vmatprep.subr.bf16.mxu1 %v3398_v56  ;;  %2337 = vmatprep.mubr.msk.f32.mxu0 %vm196_vm0, %v3413_v58 }
 0x16e   :  { %2649 = vmatpush3.bf16.msra.mxu1 %v3398_v56  ;;  %2338 = vmatmul.mubr.msk.f32.gmra.mrb[12].mxu0 %vm196_vm0, %v3429_v62 }
 0x16f   :  { %2651 = vmatprep.subr.bf16.mxu1 %v3424_v61  ;;  %2340 = vmatprep.mubr.msk.f32.mxu0 %vm196_vm0, %v3437_v0 }
 0x172   :  { %2653 = vmatpush3.bf16.msra.mxu1 %v3424_v61  ;;  %2341 = vmatmul.mubr.msk.f32.gmra.mrb[14].mxu0 %vm196_vm0, %v3453_v3 }
 0x173   :  { %2655 = vmatprep.subr.bf16.mxu1 %v3443_v2  ;;  %2343 = vmatprep.mubr.msk.f32.mxu0 %vm196_vm0, %v3462_v4 }
 0x176   :  { %2657 = vmatpush3.bf16.msra.mxu1 %v3443_v2  ;;  %2344 = vmatmul.mubr.msk.f32.gmra.mrb[16].mxu0 %vm196_vm0, %v3469_v5 }
 0x177   :  { %2346 = vmatprep.mubr.msk.f32.mxu0 %vm196_vm0, %v3474_v6 }
 0x17a   :  { %2347 = vmatmul.mubr.msk.f32.gmra.mrb[18].mxu0 %vm196_vm0, %v3483_v7 }
 0x22c   :  { %v2266_v10 = vpop.f32.mrb[0].mxu1  ;;  %v2285_v11 = vpop.f32.mrb[2].mxu0 }
 0x22d   :  { %v452_v12 = vmul.f32 %v2285_v11, %v3487_v8  ;;  %v359_v13 = vpop.f32.mrb[1].mxu1  ;;  %v442_v14 = vpop.f32.mrb[3].mxu0 }
 0x22e   :  { %v451_v15 = vmul.f32 %v442_v14, %v3489_v9  ;;  %v460_v16 = vmax.f32 %v442_v14, %v2285_v11  ;;  %v3508_v14 = vld [vmem:[%s3890_s6 + $0x8] sm:$0xff] }
 0x230   :  { %v453_v17 = vadd.f32 %v452_v12, %v451_v15  ;;  %v461_v18 = vrot.slane %v460_v16, 4  ;;  %v3513_v15 = vld [vmem:[%s3890_s6] sm:$0xff] }
 0x232   :  { %v454_v19 = vrot.slane %v453_v17, 4  ;;  %v462_v20 = vmax.f32 %v460_v16, %v461_v18  ;;  %v2327_v16 = vpop.f32.mrb[4].mxu0 }
 0x233   :  { %v684_v18 = vpop.f32.mrb[5].mxu0 }
 0x234   :  { %v455_v21 = vadd.f32 %v454_v19, %v453_v17  ;;  %v463_v22 = vrot.slane %v462_v20, 2  ;;  %v764_v17 = vmul.f32 %v2327_v16, %v3508_v14  ;;  %v763_v19 = vmul.f32 %v684_v18, %v3513_v15  ;;  %v3568_v16 = vld [vmem:[%s3890_s6 + $0x58] sm:$0xff] }
 0x236   :  { %v456_v23 = vrot.slane %v455_v21, 2  ;;  %v464_v24 = vmax.f32 %v462_v20, %v463_v22  ;;  %v3520_v20 = vld [vmem:[%s3890_s6 + $0x18] sm:$0xff]  ;;  %v2662_v22 = vpack.c.bf16 %v764_v17, %v763_v19  ;;  %v3573_v17 = vld [vmem:[%s3890_s6 + $0x50] sm:$0xff] }
 0x238   :  { %v457_v25 = vadd.f32 %v456_v23, %v455_v21  ;;  %v465_v26 = vrot.slane %v464_v24, 1  ;;  %v3525_v21 = vld [vmem:[%s3890_s6 + $0x10] sm:$0xff]  ;;  %v2330_v23 = vpop.f32.mrb[6].mxu0  ;;  %2663 = vmatprep.subr.bf16.mxu0 %v2662_v22 }
 0x239   :  { %2665 = vmatpush3.bf16.msra.mxu0 %v2662_v22 }
 0x23a   :  { %v458_v27 = vrot.slane %v457_v25, 1  ;;  %v466_v28 = vmax.f32 %v464_v24, %v465_v26  ;;  %v766_v24 = vmul.f32 %v2330_v23, %v3520_v20 }
 0x23c   :  { %v459_v29 = vadd.f32 %v458_v27, %v457_v25  ;;  %v477_v30 = vadd.f32 %v466_v28, %v359_v13  ;;  %v478_v31 = vadd.f32 %v2266_v10, %v466_v28  ;;  %v694_v25 = vpop.f32.mrb[7].mxu0  ;;  %v3532_v27 = vld [vmem:[%s3890_s6 + $0x28] sm:$0xff]  ;;  %v3537_v28 = vld [vmem:[%s3890_s6 + $0x20] sm:$0xff] }
 0x23d   :  { %v765_v26 = vmul.f32 %v694_v25, %v3525_v21 }
 0x23e   :  { %v467_v32 = vadd.f32 %v459_v29, %v359_v13  ;;  %v468_v33 = vadd.f32 %v2266_v10, %v459_v29  ;;  %v481_v38 = vmul.f32 0.2, %v477_v30  ;;  %v482_v39 = vmul.f32 0.2, %v478_v31 }
 0x23f   :  { %vm479_vm4 = vcmp.gt.f32.partialorder %v477_v30, 0.0  ;;  %vm480_vm5 = vcmp.gt.f32.partialorder %v478_v31, 0.0  ;;  %v2666_v29 = vpack.c.bf16 %v766_v24, %v765_v26 }
 0x240   :  { %vm469_vm2 = vcmp.gt.f32.partialorder %v467_v32, 0.0  ;;  %vm470_vm3 = vcmp.gt.f32.partialorder %v468_v33, 0.0  ;;  %v471_v43 = vmul.f32 0.2, %v467_v32  ;;  %v472_v44 = vmul.f32 0.2, %v468_v33 }
 0x241   :  { %v483_v59 = vsel %vm479_vm4, %v477_v30, %v481_v38  ;;  %v484_v60 = vsel %vm480_vm5, %v478_v31, %v482_v39  ;;  %v2333_v30 = vpop.f32.mrb[8].mxu0  ;;  %2667 = vmatprep.subr.bf16.mxu0 %v2666_v29  ;;  %v3544_v38 = vld [vmem:[%s3890_s6 + $0x38] sm:$0xff]  ;;  %v3549_v39 = vld [vmem:[%s3890_s6 + $0x30] sm:$0xff]  ;;  %vm1973_vm4 = vcmask 9216  }
 0x242   :  { %v473_v48 = vsel %vm469_vm2, %v467_v32, %v471_v43  ;;  %v474_v49 = vsel %vm470_vm3, %v468_v33, %v472_v44  ;;  %v768_v31 = vmul.f32 %v2333_v30, %v3532_v27  ;;  %v704_v32 = vpop.f32.mrb[9].mxu0  ;;  %2669 = vmatpush3.bf16.msra.mxu0 %v2666_v29  ;;  %v3580_v29 = vld [vmem:[%s3890_s6 + $0x68] sm:$0xff]  ;;  %v3585_v30 = vld [vmem:[%s3890_s6 + $0x60] sm:$0xff]  ;;  %vm2828_vm2 = vmpackc.low %vm1602_vm15, %vm1602_vm15 }
 0x243   :  { %v475_v53 = vadd.f32 %v473_v48, %v3493_v35  ;;  %v476_v54 = vadd.f32 %v474_v49, %v3495_v36  ;;  %v767_v33 = vmul.f32 %v704_v32, %v3537_v28  ;;  %v2336_v44 = vpop.f32.mrb[10].mxu0 }
 0x244   :  { %v770_v48 = vmul.f32 %v2336_v44, %v3544_v38  ;;  %v714_v49 = vpop.f32.mrb[11].mxu0 }
 0x245   :  { %v485_v63 = vsub.f32 %v475_v53, %v483_v59  ;;  %v486_v1 = vsub.f32 %v476_v54, %v484_v60  ;;  %v2670_v43 = vpack.c.bf16 %v768_v31, %v767_v33  ;;  %v769_v53 = vmul.f32 %v714_v49, %v3549_v39  ;;  %v3556_v54 = vld [vmem:[%s3890_s6 + $0x48] sm:$0xff]  ;;  %v3561_v59 = vld [vmem:[%s3890_s6 + $0x40] sm:$0xff]  ;;  %v3597_v49 = vld [vmem:[%s3890_s6 + $0x70] sm:$0xff] }
 0x247   :  { %v487_v10 = vmul.f32 1.442695, %v485_v63  ;;  %v489_v11 = vmul.f32 1.442695, %v486_v1  ;;  %2671 = vmatprep.subr.bf16.mxu0 %v2670_v43  ;;  %v2674_v60 = vpack.c.bf16 %v770_v48, %v769_v53  ;;  %v2339_v63 = vpop.f32.mrb[12].mxu0  ;;  %v3592_v48 = vld [vmem:[%s3890_s6 + $0x78] sm:$0xff] }
 0x248   :  { %2673 = vmatpush3.bf16.msra.mxu0 %v2670_v43  ;;  %v772_v1 = vmul.f32 %v2339_v63, %v3556_v54 }
 0x249   :  { %2854 = vpow2.f32 %v487_v10  ;;  %v724_v10 = vpop.f32.mrb[13].mxu0  ;;  %2675 = vmatprep.subr.bf16.mxu0 %v2674_v60 }
 0x24a   :  { %2856 = vpow2.f32 %v489_v11  ;;  %v771_v11 = vmul.f32 %v724_v10, %v3561_v59  ;;  %v2342_v19 = vpop.f32.mrb[14].mxu0 }
 0x24b   :  { %v774_v22 = vmul.f32 %v2342_v19, %v3568_v16  ;;  %v734_v23 = vpop.f32.mrb[15].mxu0 }
 0x24c   :  { %2677 = vmatpush3.bf16.msra.mxu0 %v2674_v60  ;;  %v2678_v18 = vpack.c.bf16 %v772_v1, %v771_v11  ;;  %v773_v24 = vmul.f32 %v734_v23, %v3573_v17  ;;  %v2345_v26 = vpop.f32.mrb[16].mxu0 }
 0x24d   :  { %v744_v31 = vpop.f32.mrb[17].mxu0  ;;  %v776_v32 = vmul.f32 %v2345_v26, %v3580_v29 }
 0x24e   :  { %2679 = vmatprep.subr.bf16.mxu0 %v2678_v18  ;;  %v2682_v25 = vpack.c.bf16 %v774_v22, %v773_v24  ;;  %v775_v33 = vmul.f32 %v744_v31, %v3585_v30  ;;  %v2348_v44 = vpop.f32.mrb[18].mxu0  ;;  %v871_v24 = vld [vmem:[%s3857_s14] sm:$0xff]  ;;  %v873_v31 = vld [vmem:[%s3857_s14 + $0x10] sm:$0xff] }
 0x24f   :  { %v754_v53 = vpop.f32.mrb[19].mxu0  ;;  %v778_v60 = vmul.f32 %v2348_v44, %v3592_v48  ;;  %v877_v44 = vld [vmem:[%s3857_s14 + $0x30] sm:$0xff] }
 0x250   :  { %2681 = vmatpush3.bf16.msra.mxu0 %v2678_v18  ;;  %v2686_v43 = vpack.c.bf16 %v776_v32, %v775_v33  ;;  %v777_v63 = vmul.f32 %v754_v53, %v3597_v49  ;;  %v875_v32 = vld [vmem:[%s3857_s14 + $0x20] sm:$0xff]  ;;  %v876_v33 = vld [vmem:[%s3857_s14 + $0x28] sm:$0xff]  ;;  %v878_v53 = vld [vmem:[%s3857_s14 + $0x38] sm:$0xff] }
 0x251   :  { %2683 = vmatprep.subr.bf16.mxu0 %v2682_v25 }
 0x252   :  { %v2690_v1 = vpack.c.bf16 %v778_v60, %v777_v63  ;;  %v2706_v60 = vpack.c.bf16 %v878_v53, %v877_v44  ;;  %v960_v63 = vld [vmem:[%s3858_s15] sm:$0xff] }
 0x253   :  { %v3499_v12 = vpop.eup %2854 }
 0x254   :  { %v3501_v13 = vpop.eup %2856  ;;  %2318 = vmatprep.mubr.f32.mxu1 %v3499_v12  ;;  %2685 = vmatpush3.bf16.msra.mxu0 %v2682_v25  ;;  %v872_v25 = vld [vmem:[%s3857_s14 + $0x8] sm:$0xff] }
 0x255   :  { %2319 = vmatmul.mubr.f32.vlgmr.msra.gmra.mrb[2].mxu1 %v3501_v13  ;;  %2687 = vmatprep.subr.bf16.mxu0 %v2686_v43  ;;  %v2694_v26 = vpack.c.bf16 %v872_v25, %v871_v24  ;;  %v964_v25 = vld [vmem:[%s3858_s15 + $0x20] sm:$0xff] }
 0x257   :  { %2695 = vmatprep.subr.bf16.mxu1 %v2694_v26 }
 0x258   :  { %2689 = vmatpush3.bf16.msra.mxu0 %v2686_v43  ;;  %2697 = vmatpush3.bf16.msra.mxu1 %v2694_v26  ;;  %v2702_v43 = vpack.c.bf16 %v876_v33, %v875_v32  ;;  %v965_v26 = vld [vmem:[%s3858_s15 + $0x28] sm:$0xff]  ;;  %v2014_v33 = vld [vmem:[%s3856_s13] ss:$0 sm:$0xff] }
 0x259   :  { %2691 = vmatprep.subr.bf16.mxu0 %v2690_v1 }
 0x25c   :  { %2693 = vmatpush3.bf16.msra.mxu0 %v2690_v1  ;;  %v961_v1 = vld [vmem:[%s3858_s15 + $0x8] sm:$0xff] }
 0x328   :  { %v2320_v10 = vpop.f32.mrb[2].mxu1 }
 0x329   :  { %2858 = vrcp.f32 %v2320_v10  ;;  %v557_v11 = vpop.f32.mrb[3].mxu1  ;;  %v1049_v10 = vld [vmem:[%s3859_s16] sm:$0xff] }
 0x32a   :  { %2860 = vrcp.f32 %v557_v11  ;;  %v2710_v11 = vpack.c.bf16 %v961_v1, %v960_v63 }
 0x32c   :  { %2711 = vmatprep.subr.bf16.mxu0 %v2710_v11 }
 0x333   :  { %v2859_v18 = vpop.eup %2858 }
 0x334   :  { %v2861_v19 = vpop.eup %2860  ;;  %v569_v23 = vmul.f32 %v2859_v18, %v3501_v13  ;;  %v1050_v18 = vld [vmem:[%s3859_s16 + $0x8] sm:$0xff] }
 0x335   :  { %v568_v22 = vmul.f32 %v2861_v19, %v3499_v12  ;;  %v874_v12 = vld [vmem:[%s3857_s14 + $0x18] sm:$0xff]  ;;  %v962_v19 = vld [vmem:[%s3858_s15 + $0x10] sm:$0xff] }
 0x336   :  { %v2698_v13 = vpack.c.bf16 %v874_v12, %v873_v31  ;;  %v2718_v31 = vpack.c.bf16 %v965_v26, %v964_v25  ;;  %v966_v12 = vld [vmem:[%s3858_s15 + $0x30] sm:$0xff] }
 0x337   :  { %2381 = vmatprep.mubr.f32.mxu0 %v568_v22  ;;  %v963_v22 = vld [vmem:[%s3858_s15 + $0x18] sm:$0xff] }
 0x338   :  { %2382 = vmatmul.mubr.f32.vlgmr.msra.gmra.mrb[20].mxu0 %v569_v23  ;;  %2699 = vmatprep.subr.bf16.mxu1 %v2698_v13  ;;  %v2726_v23 = vpack.c.bf16 %v1050_v18, %v1049_v10  ;;  %v2714_v24 = vpack.c.bf16 %v963_v22, %v962_v19  ;;  %v1051_v19 = vld [vmem:[%s3859_s16 + $0x10] sm:$0xff]  ;;  %v1052_v22 = vld [vmem:[%s3859_s16 + $0x18] sm:$0xff] }
 0x339   :  { %2701 = vmatpush3.bf16.msra.mxu1 %v2698_v13  ;;  %2713 = vmatpush3.bf16.msra.mxu0 %v2710_v11  ;;  %v967_v13 = vld [vmem:[%s3858_s15 + $0x38] sm:$0xff]  ;;  %v2730_v26 = vpack.c.bf16 %v1052_v22, %v1051_v19 }
 0x33a   :  { %2703 = vmatprep.subr.bf16.mxu1 %v2702_v43  ;;  %2715 = vmatprep.subr.bf16.mxu0 %v2714_v24  ;;  %v2722_v32 = vpack.c.bf16 %v967_v13, %v966_v12  ;;  %v1053_v12 = vld [vmem:[%s3859_s16 + $0x20] sm:$0xff]  ;;  %v1054_v13 = vld [vmem:[%s3859_s16 + $0x28] sm:$0xff] }
 0x33d   :  { %2705 = vmatpush3.bf16.msra.mxu1 %v2702_v43  ;;  %2717 = vmatpush3.bf16.msra.mxu0 %v2714_v24 }
 0x33e   :  { %2707 = vmatprep.subr.bf16.mxu1 %v2706_v60  ;;  %2719 = vmatprep.subr.bf16.mxu0 %v2718_v31 }
 0x341   :  { %2709 = vmatpush3.bf16.msra.mxu1 %v2706_v60  ;;  %2721 = vmatpush3.bf16.msra.mxu0 %v2718_v31 }
 0x342   :  { %2727 = vmatprep.subr.bf16.mxu1 %v2726_v23  ;;  %2723 = vmatprep.subr.bf16.mxu0 %v2722_v32 }
 0x345   :  { %2725 = vmatpush3.bf16.msra.mxu0 %v2722_v32  ;;  %v2734_v32 = vpack.c.bf16 %v1054_v13, %v1053_v12 }
 0x346   :  { %2743 = vmatprep.subr.bf16.mxu0 %v3301_v34 }
 0x40b   :  { %v2383_v43 = vpop.f32.mrb[20].mxu0 }
 0x40c   :  { %v858_v44 = vadd.f32 %v2383_v43, %v2014_v33  ;;  %v852_v53 = vpop.f32.mrb[21].mxu0  ;;  %v1056_v43 = vld [vmem:[%s3859_s16 + $0x38] sm:$0xff] }
 0x40d   :  { %v853_v60 = vadd.f32 %v2014_v33, %v852_v53  ;;  %v1055_v33 = vld [vmem:[%s3859_s16 + $0x30] sm:$0xff] }
 0x40e   :  { %v865_v63 = vmul.f32 1.442695, %v858_v44  ;;  %vm862_vm7 = vcmp.gt.f32.partialorder %v858_v44, 0.0 }
 0x40f   :  { %v863_v1 = vmul.f32 1.442695, %v853_v60  ;;  %vm861_vm6 = vcmp.gt.f32.partialorder %v853_v60, 0.0 }
 0x410   :  { %2862 = vpow2.f32 %v865_v63 }
 0x411   :  { %2864 = vpow2.f32 %v863_v1 }
 0x41a   :  { %v2863_v10 = vpop.eup %2862 }
 0x41b   :  { %v2865_v11 = vpop.eup %2864  ;;  %v2016_v18 = vadd.f32 -1.0, %v2863_v10 }
 0x41c   :  { %v2015_v24 = vadd.f32 -1.0, %v2865_v11 }
 0x41d   :  { %v870_v31 = vsel %vm862_vm7, %v858_v44, %v2016_v18  ;;  %v2738_v44 = vpack.c.bf16 %v1056_v43, %v1055_v33 }
 0x41e   :  { %v869_v25 = vsel %vm861_vm6, %v853_v60, %v2015_v24 }
 0x41f   :  { %2400 = vmatprep.mubr.msk.f32.mxu1 %vm286_vm1, %v869_v25 }
 0x420   :  { %2401 = vmatmul.mubr.msk.f32.vlgmr.msra.gmra.mrb[4].mxu1 %vm286_vm1, %v870_v31 }
 0x421   :  { %2729 = vmatpush3.bf16.msra.mxu1 %v2726_v23 }
 0x422   :  { %2731 = vmatprep.subr.bf16.mxu1 %v2730_v26 }
 0x425   :  { %2733 = vmatpush3.bf16.msra.mxu1 %v2730_v26 }
 0x426   :  { %2735 = vmatprep.subr.bf16.mxu1 %v2734_v32 }
 0x429   :  { %2737 = vmatpush3.bf16.msra.mxu1 %v2734_v32 }
 0x42a   :  { %2739 = vmatprep.subr.bf16.mxu1 %v2738_v44 }
 0x42d   :  { %2741 = vmatpush3.bf16.msra.mxu1 %v2738_v44 }
 0x4f3   :  { %v2402_v53 = vpop.f32.mrb[4].mxu1 }
 0x4f4   :  { %v951_v60 = vpop.f32.mrb[5].mxu1 }
 0x4f5   :  { %v2774_v63 = vpack.c.bf16 %v2402_v53, %v951_v60  ;;  %2419 = vmatprep.mubr.msk.f32.mxu0 %vm286_vm1, %v951_v60  ;;  %2438 = vmatprep.mubr.msk.f32.mxu1 %vm286_vm1, %v951_v60 }
 0x4f6   :  { %2420 = vmatmul.mubr.msk.f32.vlgmr.msra.gmra.mrb[22].mxu0 %vm286_vm1, %v2402_v53  ;;  %2439 = vmatmul.mubr.msk.f32.vlgmr.msra.gmra.mrb[6].mxu1 %vm286_vm1, %v2402_v53 }
 0x4f7   :  { %2775 = vmatprep.subr.bf16.mxu1 %v2774_v63  ;;  %2745 = vmatpush3.bf16.msra.mxu0 %v3301_v34 }
 0x4f8   :  { %2777 = vmatpush3.bf16.msra.mxu1 %v2774_v63  ;;  %2747 = vmatprep.subr.bf16.mxu0 %v3311_v37 }
 0x4f9   :  { %2480 = vmatprep.mubr.msk.f32.mxu1 %vm196_vm0, %v3324_v40 }
 0x4fb   :  { %2749 = vmatpush3.bf16.msra.mxu0 %v3311_v37  ;;  %2481 = vmatmul.mubr.msk.f32.vlgmr.msra.gmra.mrb[8].mxu1 %vm196_vm0, %v3333_v42 }
 0x4fc   :  { %2751 = vmatprep.subr.bf16.mxu0 %v3326_v41  ;;  %2483 = vmatprep.mubr.msk.f32.mxu1 %vm196_vm0, %v3348_v45 }
 0x4ff   :  { %2753 = vmatpush3.bf16.msra.mxu0 %v3326_v41  ;;  %2484 = vmatmul.mubr.msk.f32.gmra.mrb[10].mxu1 %vm196_vm0, %v3357_v47 }
 0x500   :  { %2755 = vmatprep.subr.bf16.mxu0 %v3350_v46  ;;  %2486 = vmatprep.mubr.msk.f32.mxu1 %vm196_vm0, %v3372_v50 }
 0x503   :  { %2757 = vmatpush3.bf16.msra.mxu0 %v3350_v46  ;;  %2487 = vmatmul.mubr.msk.f32.gmra.mrb[12].mxu1 %vm196_vm0, %v3381_v52 }
 0x504   :  { %2759 = vmatprep.subr.bf16.mxu0 %v3374_v51  ;;  %2489 = vmatprep.mubr.msk.f32.mxu1 %vm196_vm0, %v3396_v55 }
 0x507   :  { %2761 = vmatpush3.bf16.msra.mxu0 %v3374_v51  ;;  %2490 = vmatmul.mubr.msk.f32.gmra.mrb[14].mxu1 %vm196_vm0, %v3405_v57 }
 0x508   :  { %2763 = vmatprep.subr.bf16.mxu0 %v3398_v56  ;;  %2492 = vmatprep.mubr.msk.f32.mxu1 %vm196_vm0, %v3413_v58 }
 0x50b   :  { %2765 = vmatpush3.bf16.msra.mxu0 %v3398_v56  ;;  %2493 = vmatmul.mubr.msk.f32.gmra.mrb[16].mxu1 %vm196_vm0, %v3429_v62 }
 0x50c   :  { %2767 = vmatprep.subr.bf16.mxu0 %v3424_v61  ;;  %2495 = vmatprep.mubr.msk.f32.mxu1 %vm196_vm0, %v3437_v0 }
 0x50f   :  { %2769 = vmatpush3.bf16.msra.mxu0 %v3424_v61  ;;  %2496 = vmatmul.mubr.msk.f32.gmra.mrb[18].mxu1 %vm196_vm0, %v3453_v3 }
 0x510   :  { %2771 = vmatprep.subr.bf16.mxu0 %v3443_v2  ;;  %2498 = vmatprep.mubr.msk.f32.mxu1 %vm196_vm0, %v3462_v4 }
 0x513   :  { %2773 = vmatpush3.bf16.msra.mxu0 %v3443_v2  ;;  %2499 = vmatmul.mubr.msk.f32.gmra.mrb[20].mxu1 %vm196_vm0, %v3469_v5 }
 0x514   :  { %2501 = vmatprep.mubr.msk.f32.mxu1 %vm196_vm0, %v3474_v6 }
 0x517   :  { %2502 = vmatmul.mubr.msk.f32.gmra.mrb[22].mxu1 %vm196_vm0, %v3483_v7 }
 0x5c9   :  { %v2421_v34 = vpop.f32.mrb[22].mxu0  ;;  %v2440_v37 = vpop.f32.mrb[6].mxu1 }
 0x5ca   :  { %v1133_v40 = vmul.f32 %v2440_v37, %v3487_v8  ;;  %v1040_v41 = vpop.f32.mrb[23].mxu0  ;;  %v1123_v42 = vpop.f32.mrb[7].mxu1 }
 0x5cb   :  { %v1132_v45 = vmul.f32 %v1123_v42, %v3489_v9  ;;  %v1141_v46 = vmax.f32 %v1123_v42, %v2440_v37 }
 0x5cd   :  { %v1134_v47 = vadd.f32 %v1133_v40, %v1132_v45  ;;  %v1142_v50 = vrot.slane %v1141_v46, 4 }
 0x5ce   :  { %v2482_v51 = vpop.f32.mrb[8].mxu1 }
 0x5cf   :  { %v1135_v52 = vrot.slane %v1134_v47, 4  ;;  %v1143_v55 = vmax.f32 %v1141_v46, %v1142_v50  ;;  %v1397_v56 = vmul.f32 %v2482_v51, %v3508_v14  ;;  %v1317_v57 = vpop.f32.mrb[9].mxu1 }
 0x5d0   :  { %v1396_v58 = vmul.f32 %v1317_v57, %v3513_v15 }
 0x5d1   :  { %v1136_v61 = vadd.f32 %v1135_v52, %v1134_v47  ;;  %v1144_v62 = vrot.slane %v1143_v55, 2 }
 0x5d2   :  { %v2778_v0 = vpack.c.bf16 %v1397_v56, %v1396_v58  ;;  %v2485_v2 = vpop.f32.mrb[10].mxu1 }
 0x5d3   :  { %v1137_v3 = vrot.slane %v1136_v61, 2  ;;  %v1145_v4 = vmax.f32 %v1143_v55, %v1144_v62  ;;  %v1399_v5 = vmul.f32 %v2485_v2, %v3520_v20  ;;  %v1327_v6 = vpop.f32.mrb[11].mxu1 }
 0x5d4   :  { %v1398_v7 = vmul.f32 %v1327_v6, %v3525_v21  ;;  %2779 = vmatprep.subr.bf16.mxu1 %v2778_v0 }
 0x5d5   :  { %v1138_v8 = vadd.f32 %v1137_v3, %v1136_v61  ;;  %v1146_v9 = vrot.slane %v1145_v4, 1  ;;  %2781 = vmatpush3.bf16.msra.mxu1 %v2778_v0 }
 0x5d6   :  { %v2782_v23 = vpack.c.bf16 %v1399_v5, %v1398_v7  ;;  %v2488_v14 = vpop.f32.mrb[12].mxu1 }
 0x5d7   :  { %v1139_v1 = vrot.slane %v1138_v8, 1  ;;  %v1147_v10 = vmax.f32 %v1145_v4, %v1146_v9  ;;  %v1401_v15 = vmul.f32 %v2488_v14, %v3532_v27  ;;  %v1337_v11 = vpop.f32.mrb[13].mxu1  ;;  %v1506_v9 = vld [vmem:[%s3861_s18 + $0x10] sm:$0xff] }
 0x5d8   :  { %v1400_v18 = vmul.f32 %v1337_v11, %v3537_v28  ;;  %2783 = vmatprep.subr.bf16.mxu1 %v2782_v23  ;;  %v1510_v11 = vld [vmem:[%s3861_s18 + $0x30] sm:$0xff] }
 0x5d9   :  { %v1140_v19 = vadd.f32 %v1139_v1, %v1138_v8  ;;  %v1158_v22 = vadd.f32 %v1147_v10, %v1040_v41  ;;  %v1159_v20 = vadd.f32 %v2421_v34, %v1147_v10  ;;  %2785 = vmatpush3.bf16.msra.mxu1 %v2782_v23  ;;  %v1507_v23 = vld [vmem:[%s3861_s18 + $0x18] sm:$0xff]  ;;  %v1508_v1 = vld [vmem:[%s3861_s18 + $0x20] sm:$0xff]  ;;  %v1509_v10 = vld [vmem:[%s3861_s18 + $0x28] sm:$0xff] }
 0x5da   :  { %v2786_v24 = vpack.c.bf16 %v1401_v15, %v1400_v18  ;;  %v2491_v21 = vpop.f32.mrb[14].mxu1  ;;  %v2814_v14 = vpack.c.bf16 %v1507_v23, %v1506_v9  ;;  %v2818_v15 = vpack.c.bf16 %v1509_v10, %v1508_v1  ;;  %v1511_v18 = vld [vmem:[%s3861_s18 + $0x38] sm:$0xff] }
 0x5db   :  { %v1148_v25 = vadd.f32 %v1140_v19, %v1040_v41  ;;  %v1149_v26 = vadd.f32 %v2421_v34, %v1140_v19  ;;  %v1347_v31 = vpop.f32.mrb[15].mxu1  ;;  %v1162_v12 = vmul.f32 0.2, %v1158_v22  ;;  %v1163_v13 = vmul.f32 0.2, %v1159_v20 }
 0x5dc   :  { %v1403_v32 = vmul.f32 %v2491_v21, %v3544_v38  ;;  %v1402_v33 = vmul.f32 %v1347_v31, %v3549_v39  ;;  %2787 = vmatprep.subr.bf16.mxu1 %v2786_v24  ;;  %vm1160_vm10 = vcmp.gt.f32.partialorder %v1158_v22, 0.0  ;;  %vm1161_vm11 = vcmp.gt.f32.partialorder %v1159_v20, 0.0 }
 0x5dd   :  { %vm1150_vm8 = vcmp.gt.f32.partialorder %v1148_v25, 0.0  ;;  %vm1151_vm9 = vcmp.gt.f32.partialorder %v1149_v26, 0.0  ;;  %v1152_v27 = vmul.f32 0.2, %v1148_v25  ;;  %v1153_v28 = vmul.f32 0.2, %v1149_v26  ;;  %2789 = vmatpush3.bf16.msra.mxu1 %v2786_v24 }
 0x5de   :  { %v2790_v43 = vpack.c.bf16 %v1403_v32, %v1402_v33  ;;  %v2494_v44 = vpop.f32.mrb[16].mxu1  ;;  %v1164_v40 = vsel %vm1160_vm10, %v1158_v22, %v1162_v12  ;;  %v1165_v41 = vsel %vm1161_vm11, %v1159_v20, %v1163_v13  ;;  %v2822_v19 = vpack.c.bf16 %v1511_v18, %v1510_v11  ;;  %v2039_v22 = vld [vmem:[%s3860_s17] ss:$0 sm:$0xff]  ;;  %v1890_v11 = vld [vmem:[%s3851_s8 + $0x8] sm:$0xff]  ;;  %v1891_v18 = vld [vmem:[%s3851_s8 + $0x10] sm:$0xff] }
 0x5df   :  { %v1154_v53 = vsel %vm1150_vm8, %v1148_v25, %v1152_v27  ;;  %v1155_v60 = vsel %vm1151_vm9, %v1149_v26, %v1153_v28  ;;  %v1405_v63 = vmul.f32 %v2494_v44, %v3556_v54  ;;  %v1357_v34 = vpop.f32.mrb[17].mxu1  ;;  %v3035_v44 = vmov 0.0  }
 0x5e0   :  { %v1156_v37 = vadd.f32 %v1154_v53, %v3493_v35  ;;  %v1157_v38 = vadd.f32 %v1155_v60, %v3495_v36  ;;  %v1404_v39 = vmul.f32 %v1357_v34, %v3561_v59  ;;  %2791 = vmatprep.subr.bf16.mxu1 %v2790_v43  ;;  %v2044_v53 = vld [vmem:[%s3862_s19] ss:$0 sm:$0xff] }
 0x5e1   :  { %2793 = vmatpush3.bf16.msra.mxu1 %v2790_v43  ;;  %v3033_v43 = vmov 0.0|0.0  }
 0x5e2   :  { %v1166_v42 = vsub.f32 %v1156_v37, %v1164_v40  ;;  %v1167_v45 = vsub.f32 %v1157_v38, %v1165_v41  ;;  %v2794_v46 = vpack.c.bf16 %v1405_v63, %v1404_v39  ;;  %v2497_v47 = vpop.f32.mrb[18].mxu1  ;;  %v1609_v41 = vld [vmem:[%s3863_s20] sm:$0x1] }
 0x5e3   :  { %v1407_v50 = vmul.f32 %v2497_v47, %v3568_v16  ;;  %v1367_v51 = vpop.f32.mrb[19].mxu1 }
 0x5e4   :  { %v1168_v52 = vmul.f32 1.442695, %v1166_v42  ;;  %v1170_v54 = vmul.f32 1.442695, %v1167_v45  ;;  %v1406_v55 = vmul.f32 %v1367_v51, %v3573_v17  ;;  %2795 = vmatprep.subr.bf16.mxu1 %v2794_v46  ;;  %v1689_v42 = vlaneseq }
 0x5e5   :  { %2797 = vmatpush3.bf16.msra.mxu1 %v2794_v46 }
 0x5e6   :  { %2866 = vpow2.f32 %v1168_v52  ;;  %v2798_v35 = vpack.c.bf16 %v1407_v50, %v1406_v55  ;;  %v2500_v56 = vpop.f32.mrb[20].mxu1  ;;  %v1690_v45 = vshrl.u32 %v1689_v42, 7 }
 0x5e7   :  { %2868 = vpow2.f32 %v1170_v54  ;;  %v1377_v57 = vpop.f32.mrb[21].mxu1  ;;  %v1409_v16 = vmul.f32 %v2500_v56, %v3580_v29 }
 0x5e8   :  { %2799 = vmatprep.subr.bf16.mxu1 %v2798_v35  ;;  %v1408_v58 = vmul.f32 %v1377_v57, %v3585_v30  ;;  %v1691_v47 = vsub.s32 0, %v1690_v45 }
 0x5e9   :  { %2801 = vmatpush3.bf16.msra.mxu1 %v2798_v35 }
 0x5ea   :  { %v2802_v61 = vpack.c.bf16 %v1409_v16, %v1408_v58  ;;  %v2503_v62 = vpop.f32.mrb[22].mxu1  ;;  %v1702_v58 = vld [vmem:[#allocation7 + $0x8] sm:$0xff] }
 0x5eb   :  { %v1387_v17 = vpop.f32.mrb[23].mxu1  ;;  %v1411_v0 = vmul.f32 %v2503_v62, %v3592_v48  ;;  %v1504_v48 = vld [vmem:[%s3861_s18] sm:$0xff] }
 0x5ec   :  { %v1410_v2 = vmul.f32 %v1387_v17, %v3597_v49  ;;  %2803 = vmatprep.subr.bf16.mxu1 %v2802_v61  ;;  %v1505_v49 = vld [vmem:[%s3861_s18 + $0x8] sm:$0xff] }
 0x5ed   :  { %2805 = vmatpush3.bf16.msra.mxu1 %v2802_v61  ;;  %v2810_v8 = vpack.c.bf16 %v1505_v49, %v1504_v48 }
 0x5ee   :  { %v2806_v3 = vpack.c.bf16 %v1411_v0, %v1410_v2 }
 0x5ef   :  { %2811 = vmatprep.subr.bf16.mxu0 %v2810_v8 }
 0x5f0   :  { %v2867_v36 = vpop.eup %2866  ;;  %2807 = vmatprep.subr.bf16.mxu1 %v2806_v3 }
 0x5f1   :  { %v2869_v59 = vpop.eup %2868  ;;  %2473 = vmatprep.mubr.f32.mxu0 %v2867_v36  ;;  %2809 = vmatpush3.bf16.msra.mxu1 %v2806_v3 }
 0x5f2   :  { %2474 = vmatmul.mubr.f32.vlgmr.msra.gmra.mrb[24].mxu0 %v2869_v59  ;;  %2826 = vmatprep.subr.bf16.mxu1 %v3033_v43 }
 0x5f3   :  { %2813 = vmatpush3.bf16.msra.mxu0 %v2810_v8 }
 0x5f4   :  { %2815 = vmatprep.subr.bf16.mxu0 %v2814_v14 }
 0x5f7   :  { %2817 = vmatpush3.bf16.msra.mxu0 %v2814_v14 }
 0x5f8   :  { %2819 = vmatprep.subr.bf16.mxu0 %v2818_v15 }
 0x5fb   :  { %2821 = vmatpush3.bf16.msra.mxu0 %v2818_v15  ;;  %v1889_v15 = vld [vmem:[%s3851_s8] sm:$0xff] }
 0x5fc   :  { %2823 = vmatprep.subr.bf16.mxu0 %v2822_v19 }
 0x5ff   :  { %2825 = vmatpush3.bf16.msra.mxu0 %v2822_v19  ;;  %v2838_v19 = vpack.c.bf16 %v1890_v11, %v1889_v15 }
 0x6c5   :  { %v2475_v4 = vpop.f32.mrb[24].mxu0 }
 0x6c6   :  { %2870 = vrcp.f32 %v2475_v4  ;;  %v1238_v5 = vpop.f32.mrb[25].mxu0 }
 0x6c7   :  { %2872 = vrcp.f32 %v1238_v5 }
 0x6d0   :  { %v2871_v6 = vpop.eup %2870 }
 0x6d1   :  { %v2873_v29 = vpop.eup %2872  ;;  %v1250_v30 = vmul.f32 %v2871_v6, %v2869_v59 }
 0x6d2   :  { %v1249_v7 = vmul.f32 %v2873_v29, %v2867_v36  ;;  %v1701_v36 = vld [vmem:[#allocation7] sm:$0xff] }
 0x6d4   :  { %2536 = vmatprep.mubr.f32.mxu1 %v1249_v7 }
 0x6d5   :  { %2537 = vmatmul.mubr.f32.vlgmr.msra.gmra.mrb[24].mxu1 %v1250_v30 }
 0x6d6   :  { %2562 = vmatprep.mubr.msk.f32.mxu1 %vm3034_vm14, %v3035_v44 }
 0x7a8   :  { %v2538_v20 = vpop.f32.mrb[24].mxu1 }
 0x7a9   :  { %v1491_v24 = vadd.f32 %v2538_v20, %v2039_v22  ;;  %v1485_v21 = vpop.f32.mrb[25].mxu1 }
 0x7aa   :  { %v1486_v25 = vadd.f32 %v2039_v22, %v1485_v21  ;;  %v1892_v22 = vld [vmem:[%s3851_s8 + $0x18] sm:$0xff] }
 0x7ab   :  { %v1498_v26 = vmul.f32 1.442695, %v1491_v24  ;;  %vm1495_vm13 = vcmp.gt.f32.partialorder %v1491_v24, 0.0  ;;  %v2841_v20 = vpack.c.bf16 %v1892_v22, %v1891_v18 }
 0x7ac   :  { %v1496_v31 = vmul.f32 1.442695, %v1486_v25  ;;  %vm1494_vm12 = vcmp.gt.f32.partialorder %v1486_v25, 0.0 }
 0x7ad   :  { %2874 = vpow2.f32 %v1498_v26 }
 0x7ae   :  { %2876 = vpow2.f32 %v1496_v31 }
 0x7b7   :  { %v2875_v12 = vpop.eup %2874 }
 0x7b8   :  { %v2877_v13 = vpop.eup %2876  ;;  %v2041_v32 = vadd.f32 -1.0, %v2875_v12 }
 0x7b9   :  { %v2040_v33 = vadd.f32 -1.0, %v2877_v13  ;;  %v1815_v13 = vld [vmem:[%s3891_s0] sm:$0x3] }
 0x7ba   :  { %v1503_v28 = vsel %vm1495_vm13, %v1491_v24, %v2041_v32  ;;  %v2048_v24 = vld [vmem:[%s3864_s21] ss:$0 sm:$0xff]  ;;  %s3036_s21 = smov [#allocation11]  }
 0x7bb   :  { %v1502_v27 = vsel %vm1494_vm12, %v1486_v25, %v2040_v33  ;;  %s1981_s25 = sshll.u32 %s3036_s21, 4  ;;  %s1982_s25 = int_to_ptr.vmem [resolvable:$true] %s1981_s25 }
 0x7bc   :  { %2555 = vmatprep.mubr.msk.f32.mxu0 %vm286_vm1, %v1502_v27  ;;  %v2052_v27 = vld [vmem:[%s3892_s7] ss:$0 sm:$0xff]  ;;  %s2996_s29 = scalar_lea.vmem %s1982_s25, 32  ;;  %p3001_p13 = scmp.lt.s32.totalorder %s1982_s25, %s1982_s25 }
 0x7bd   :  { %2556 = vmatmul.mubr.msk.f32.vlgmr.msra.gmra.mrb[26].mxu0 %vm286_vm1, %v1503_v28  ;;  %p2997_p12 = scmp.ne.s32.totalorder %s1982_s25, %s2996_s29  ;;  %p3002_p0 = scmp.lt.s32.totalorder %s2996_s29, %s2996_s29 }
 0x7bf   :  { %p3003_p1 = por %p3002_p0, %p3001_p13 }
 0x7c1   :  { %p3004_p2 = pnand %p3003_p1, %p2997_p12 }
 0x890   :  { %v2557_v60 = vpop.f32.mrb[26].mxu0 }
 0x891   :  { %v1584_v63 = vpop.f32.mrb[27].mxu0  ;;  %v1601_v38 = vmul.f32 %v2557_v60, %v2044_v53 }
 0x892   :  { %v2827_v34 = vpack.c.bf16 %v2557_v60, %v1584_v63  ;;  %v1600_v37 = vmul.f32 %v2044_v53, %v1584_v63 }
 0x893   :  { %v1606_v40 = vsel %vm1602_vm15, %v1601_v38, 0.0 }
 0x894   :  { %2829 = vmatpush3.bf16.xpose.msk.msra.mxu1 %vm2828_vm2, %v2827_v34  ;;  %2831 = vmatprep.subr.bf16.mxu0 %v2827_v34  ;;  %v1603_v39 = vsel %vm1602_vm15, %v1600_v37, 0.0 }
 0x895   :  { %2833 = vmatpush3.bf16.msra.mxu0 %v2827_v34  ;;  %1604 = vadd.xlane.f32.xlu0 %v1603_v39 }
 0x896   :  { %2834 = vmatprep.subr.bf16.mxu0 %v3033_v43  ;;  %2837 = vmatprep.subr.bf16.mxu1 %v3033_v43 }
 0x899   :  { %1607 = vadd.xlane.f32.xlu0 %v1606_v40 }
 0x89b   :  { %2563 = vmatmul.mubr.msk.f32.vlgmr.msra.gmra.mrb[26].mxu1 %vm1602_vm15, %v1609_v41 }
 0x89c   :  { %2587 = vmatprep.mubr.msk.f32.mxu1 %vm3034_vm14, %v3035_v44  ;;  %2839 = vmatpush3.bf16.msra.mxu1 %v2838_v19 }
 0x89d   :  { %2840 = vmatprep.subr.bf16.mxu1 %v3033_v43 }
 0x8a0   :  { %2842 = vmatpush3.bf16.msra.mxu1 %v2841_v20 }
 0x922   :  { %v1605_v46 = vpop.xlane.xlu0 %1604 }
 0x926   :  { %v1608_v54 = vpop.xlane.xlu0 %1607 }
 0x96e   :  { %v1685_v50 = vpop.f32.mrb[26].mxu1 }
 0x96f   :  { %v1692_v51 = vrot.slane %v1685_v50, %v1691_v47  ;;  %v2564_v52 = vpop.f32.mrb[27].mxu1 }
 0x971   :  { %v1693_v55 = vadd.f32 %v1692_v51, %v1605_v46  ;;  %v1694_v35 = vadd.f32 %v1692_v51, %v1608_v54 }
 0x973   :  { %v1697_v59 = vmul.f32 0.2, %v1693_v55  ;;  %v1698_v56 = vmul.f32 0.2, %v1694_v35  ;;  %vm1695_vm1 = vcmp.gt.f32.partialorder %v1693_v55, 0.0  ;;  %vm1696_vm3 = vcmp.gt.f32.partialorder %v1694_v35, 0.0 }
 0x975   :  { %v1699_v57 = vsel %vm1695_vm1, %v1693_v55, %v1697_v59  ;;  %v1700_v16 = vsel %vm1696_vm3, %v1694_v35, %v1698_v56 }
 0x976   :  { %v1703_v61 = vadd.f32 %v1701_v36, %v1699_v57  ;;  %v1704_v17 = vadd.f32 %v1702_v58, %v1700_v16 }
 0x978   :  { %v1705_v62 = vsel %vm196_vm0, %v1703_v61, -inf  ;;  %v1708_v0 = vsel %vm196_vm0, %v1704_v17, -inf }
 0x979   :  { %1706 = vmax.xlane.f32.xlu1 %v1705_v62 }
 0x97d   :  { %1709 = vmax.xlane.f32.xlu1 %v1708_v0 }
 0xa06   :  { %v1707_v2 = vpop.xlane.xlu1 %1706 }
 0xa07   :  { %v1711_v3 = vsub.f32 %v1703_v61, %v1707_v2 }
 0xa09   :  { %v1713_v4 = vmul.f32 1.442695, %v1711_v3 }
 0xa0a   :  { %v1710_v5 = vpop.xlane.xlu1 %1709 }
 0xa0b   :  { %2878 = vpow2.f32 %v1713_v4  ;;  %v1712_v6 = vsub.f32 %v1704_v17, %v1710_v5 }
 0xa0d   :  { %v1715_v29 = vmul.f32 1.442695, %v1712_v6 }
 0xa0f   :  { %2880 = vpow2.f32 %v1715_v29 }
 0xa15   :  { %v2879_v7 = vpop.eup %2878 }
 0xa16   :  { %v1717_v30 = vsel %vm196_vm0, %v2879_v7, 0.0 }
 0xa17   :  { %1718 = vadd.xlane.f32.xlu0 %v1717_v30 }
 0xa19   :  { %v2881_v48 = vpop.eup %2880 }
 0xa1a   :  { %v1720_v49 = vsel %vm196_vm0, %v2881_v48, 0.0 }
 0xa1b   :  { %1721 = vadd.xlane.f32.xlu1 %v1720_v49 }
 0xaa4   :  { %v1719_v8 = vpop.xlane.xlu0 %1718 }
 0xaa5   :  { %2882 = vrcp.f32 %v1719_v8 }
 0xaa8   :  { %v1722_v9 = vpop.xlane.xlu1 %1721 }
 0xaa9   :  { %2884 = vrcp.f32 %v1722_v9 }
 0xaaf   :  { %v2883_v23 = vpop.eup %2882 }
 0xab0   :  { %v1725_v14 = vmul.f32 %v2883_v23, %v2879_v7 }
 0xab2   :  { %2569 = vmatprep.mubr.msk.f32.mxu0 %vm196_vm0, %v1725_v14 }
 0xab3   :  { %v2885_v1 = vpop.eup %2884 }
 0xab4   :  { %v1726_v10 = vmul.f32 %v2885_v1, %v2881_v48 }
 0xab6   :  { %2570 = vmatmul.mubr.msk.f32.vlgmr.msra.gmra.mrb[28].mxu0 %vm196_vm0, %v1726_v10 }
 0xab7   :  { %2576 = vmatprep.mubr.msk.f32.mxu0 %vm3034_vm14, %v3035_v44 }
 0xb89   :  { %v2571_v21 = vpop.f32.mrb[28].mxu0 }
 0xb8a   :  { %v1812_v25 = vadd.f32 %v2571_v21, %v2048_v24  ;;  %v1806_v26 = vpop.f32.mrb[29].mxu0 }
 0xb8b   :  { %v1807_v31 = vadd.f32 %v2048_v24, %v1806_v26 }
 0xb8d   :  { %v2835_v12 = vpack.c.bf16 %v1812_v25, %v1807_v31 }
 0xb8f   :  { %2836 = vmatpush3.bf16.msra.mxu0 %v2835_v12 }
 0xb92   :  { %2577 = vmatmul.mubr.msk.f32.vlgmr.msra.gmra.mrb[30].mxu0 %vm196_vm0, %v1815_v13 }
 0xc65   :  { %v1885_v32 = vpop.f32.mrb[30].mxu0 }
 0xc66   :  { %v2578_v33 = vpop.f32.mrb[31].mxu0  ;;  %2588 = vmatmul.mubr.msk.f32.vlgmr.msra.gmra.mrb[28].mxu1 %vm1602_vm15, %v1885_v32 }
 0xd39   :  { %v1969_v28 = vpop.f32.mrb[28].mxu1 }
 0xd3a   :  { %v1970_v43 = vadd.f32 %v2052_v27, %v1969_v28  ;;  %v2589_v44 = vpop.f32.mrb[29].mxu1 }
 0xd3c   :  { %1974 = vst.msk [vmem:[#allocation11] sm:$0x3] %vm1973_vm4, %v1970_v43 }
 0xd3d   :  { %3007 = shalt.err (!%p3004_p2)
}
 0xd3e   :  { %s3893_s2 = sld [smem:[#allocation25_spill]] }
 0xd44   :  { %s3008_s15 = scalar_lea.hbm %s3893_s2, 32 }
 0xd45   :  { %p3009_p3 = scmp.ne.s32.totalorder %s3893_s2, %s3008_s15  ;;  %p3012_p4 = scmp.lt.u32.totalorder %s3008_s15, %s3893_s2 }
 0xd47   :  { %p3014_p5 = pnand %p3012_p4, %p3009_p3 }
 0xd49   :  { %3017 = shalt.err (!%p3014_p5)
}
 0xd4a   :  { %1984 = dma.vmem_to_hbm [thread:$0]  %s1982_s25, 32, %s3893_s2, [#allocation4]  }
 0xd4b   :  { %3024 = dma.done.wait [#allocation4], 32  }
 0xd4c   :  { %3025 = vsyncadd [#allocation4], 4294967264 }
 0xd4d   :  { %1988 = vsyncpa [#allocation3], 1 }
 0xd4e   :  { %1989 = vsyncpa [#allocation6], 1 }
 0xd4f   :  { %1990 = vsyncpa [#allocation9], 1 }
 0xd50   :  { %1991 = vsyncpa [#allocation4], 1 }

</bundles_post_ra>
